<compile_context>
chip_gen: v7x
topology: tpu7x:2x2x1
jax: 0.10.0
libtpu: 0.0.40
codegen_flags: <defaults>
</compile_context>

<pallas_src>
import jax
import jax.numpy as jnp
from jax.experimental import pallas as pl
from jax.experimental.pallas import tpu as pltpu


def bkt_rnn_kernel(x_ref, y_ref, wxh_ref, w_ref, bh_ref, by_ref, prior_ref,
                   corrects_ref, latents_ref, loss_ref, zb_ref):
    T = x_ref.shape[0]
    Hp4 = w_ref.shape[0]            # H + 4 (W is zero-row padded)
    H = Hp4 - 4

    # ---- Hoisted loss prologue (independent of the recurrence): EUP/XLU work
    # here overlaps the recurrence's MXU latency instead of adding tail cycles.
    yv = y_ref[...]                                   # (1, T) f32 logits
    m = jnp.max(yv)
    lse = m + jnp.log(jnp.sum(jnp.exp(yv - m)))
    log_softmax_y = yv - lse

    # ---- Hoisted input projection: one (T, x)@(x, H) bf16 MXU pass for all
    # T steps; stage fused per-step bias rows zb[i] = [xh_i | by] in VMEM.
    xh = (jnp.dot(x_ref[...], wxh_ref[...], preferred_element_type=jnp.float32)
          + bh_ref[...])
    zb_ref[:, 0:H] = xh
    zb_ref[:, H:Hp4] = jnp.broadcast_to(by_ref[...], (T, 4))

    W = w_ref[...]                                    # (H+4, H+4) bf16, loaded once
    lat_prev = jnp.full((1, 1), prior_ref[0], jnp.float32)

    lane = jax.lax.broadcasted_iota(jnp.int32, (1, T), 1)
    cvec = jnp.zeros((1, T), jnp.float32)
    lvec = jnp.zeros((1, T), jnp.float32)

    za = None
    # ---- Recurrence: T is a static Python int -> full trace-time unroll. ---
    for i in range(T):
        if i == 0:
            # h == 0 at step 0, so the matvec contributes nothing: z0 == zb[0].
            z = zb_ref[pl.ds(0, 1), :]
        else:
            # z = za_prev @ [Whh|Wy ; 0] + [xh_i | by]; a single bf16 MXU pass,
            # f32 accumulate. The head lanes of za_prev hit the zero rows.
            z = (jnp.dot(za.astype(jnp.bfloat16), W,
                         preferred_element_type=jnp.float32)
                 + zb_ref[pl.ds(i, 1), :])
        za = jax.nn.sigmoid(z)                        # (1, H+4): [h_new | l f g s]
        l = za[:, H + 0:H + 1]
        f = za[:, H + 1:H + 2]
        g = za[:, H + 2:H + 3]
        s = za[:, H + 3:H + 4]

        # BKT update (all values stay as (1,1) f32 vectors on the VPU).
        num1 = lat_prev * (1.0 - s)
        num0 = lat_prev * s
        correct = num1 + (1.0 - lat_prev) * g         # == k_t1's denominator
        denom0 = num0 + (1.0 - lat_prev) * (1.0 - g)
        k_t1 = num1 / correct                         # exact divides: off the
        k_t0 = num0 / denom0                          # critical path -> free
        m_t = k_t1 * correct + k_t0 * (1.0 - correct)
        lat_next = m_t * (1.0 - f) + (1.0 - m_t) * l

        # literal reference semantics:
        #   latents[i], corrects[i] = (correct, lat_next)
        # in-loop selects ride under step i+1's MXU latency.
        lvec = jnp.where(lane == i, correct, lvec)
        cvec = jnp.where(lane == i, lat_next, cvec)
        # next iteration reads latents[i] (== correct) as its previous latent
        lat_prev = correct

    corrects_ref[...] = cvec
    latents_ref[...] = lvec
    # CrossEntropyLoss(y, corrects): y = logits, corrects = soft targets.
    loss_ref[...] = -jnp.sum(cvec * log_softmax_y, keepdims=True)


def bkt_rnn_forward(x, y, wxh, whh, bh, wy, by, prior):
    """x: [T, x_size], y: [T] float. Returns (corrects [T], latents [T], loss)."""
    T, _ = x.shape
    H = whh.shape[0]

    y2 = y.reshape(1, T).astype(jnp.float32)
    bh2 = bh.reshape(1, H).astype(jnp.float32)
    by2 = by.reshape(1, 4).astype(jnp.float32)
    # Pre-concatenate the recurrent weights so the kernel does one fused matvec
    # per step, and zero-pad 4 rows so the full activation za is the LHS:
    #   W = [Whh | Wy ; 0]  -> (H+4, H+4), stored bf16 (single MXU pass).
    w_cat = jnp.concatenate(
        [whh.astype(jnp.float32), wy.astype(jnp.float32)], axis=1)
    w_pad = jnp.concatenate(
        [w_cat, jnp.zeros((4, H + 4), jnp.float32)], axis=0).astype(jnp.bfloat16)
    prior_arr = jnp.asarray([prior], jnp.float32)

    vmem = pl.BlockSpec(memory_space=pltpu.MemorySpace.VMEM)
    smem = pl.BlockSpec(memory_space=pltpu.MemorySpace.SMEM)

    corrects, latents, loss = pl.pallas_call(
        bkt_rnn_kernel,
        out_shape=(
            jax.ShapeDtypeStruct((1, T), jnp.float32),
            jax.ShapeDtypeStruct((1, T), jnp.float32),
            jax.ShapeDtypeStruct((1, 1), jnp.float32),
        ),
        in_specs=[vmem, vmem, vmem, vmem, vmem, vmem, smem],
        out_specs=(vmem, vmem, vmem),
        scratch_shapes=[pltpu.VMEM((T, H + 4), jnp.float32)],
    )(x.astype(jnp.bfloat16), y2, wxh.astype(jnp.bfloat16), w_pad, bh2, by2,
      prior_arr)

    return corrects.reshape(T), latents.reshape(T), loss.reshape(())


if __name__ == "__main__":
    # Small, forward-consistent shapes: seq T=8, x_size=4, hidden_size=32.
    T, X_SIZE, HIDDEN = 8, 4, 32

    key = jax.random.PRNGKey(0)
    kx, ky, k1, k2, k3, k4, k5 = jax.random.split(key, 7)

    x = jax.random.normal(kx, (T, X_SIZE), jnp.float32)
    y = jax.random.normal(ky, (T,), jnp.float32)

    # Deterministic parameter init (the torch module only declares shapes).
    Wxh = 0.5 * jax.random.normal(k1, (X_SIZE, HIDDEN), jnp.float32)
    Whh = 0.5 * jax.random.normal(k2, (HIDDEN, HIDDEN), jnp.float32)
    bh = 0.1 * jax.random.normal(k3, (HIDDEN,), jnp.float32)
    Wy = 0.5 * jax.random.normal(k4, (HIDDEN, 4), jnp.float32)
    by = 0.1 * jax.random.normal(k5, (4,), jnp.float32)
    prior = 0.0  # module sets self.prior = 0

    corrects, latents, loss = bkt_rnn_forward(x, y, Wxh, Whh, bh, Wy, by, prior)
    jax.block_until_ready((corrects, latents, loss))
    print("KERNEL_OK")
</pallas_src>

<mosaic_0001>
module attributes {stable_mosaic.version = 11 : i64} {
  func.func @bkt_rnn_kernel(%arg0: memref<8x4xbf16, #tpu.memory_space<vmem>>, %arg1: memref<1x8xf32, #tpu.memory_space<vmem>>, %arg2: memref<4x32xbf16, #tpu.memory_space<vmem>>, %arg3: memref<36x36xbf16, #tpu.memory_space<vmem>>, %arg4: memref<1x32xf32, #tpu.memory_space<vmem>>, %arg5: memref<1x4xf32, #tpu.memory_space<vmem>>, %arg6: memref<1xf32, #tpu.memory_space<smem>>, %arg7: memref<1x8xf32, #tpu.memory_space<vmem>>, %arg8: memref<1x8xf32, #tpu.memory_space<vmem>>, %arg9: memref<1x1xf32, #tpu.memory_space<vmem>>, %arg10: memref<8x36xf32, #tpu.memory_space<vmem>>) attributes {dimension_semantics = [], scalar_prefetch = 0 : i64, scratch_operands = 1 : i64, tpu.core_type = #tpu.core_type<tc>} {
    %c0 = arith.constant 0 : index
    %c0_0 = arith.constant 0 : index
    %0 = vector.load %arg1[%c0, %c0_0] : memref<1x8xf32, #tpu.memory_space<vmem>>, vector<1x8xf32>
    %1 = vector.shape_cast %0 : vector<1x8xf32> to vector<1x1x8xf32>
    %cst = arith.constant dense<0xFF800000> : vector<1xf32>
    %2 = vector.multi_reduction <maximumf>, %1, %cst [1, 2] : vector<1x1x8xf32> to vector<1xf32>
    %3 = vector.shape_cast %2 : vector<1xf32> to vector<1x1x1xf32>
    %4 = vector.extract %3[0, 0, 0] : f32 from vector<1x1x1xf32>
    %5 = vector.broadcast %4 : f32 to vector<1x8xf32>
    %6 = arith.subf %0, %5 : vector<1x8xf32>
    %7 = math.exp %6 : vector<1x8xf32>
    %8 = vector.shape_cast %7 : vector<1x8xf32> to vector<1x1x8xf32>
    %cst_1 = arith.constant dense<0.000000e+00> : vector<1xf32>
    %9 = vector.multi_reduction <add>, %8, %cst_1 [1, 2] : vector<1x1x8xf32> to vector<1xf32>
    %10 = vector.shape_cast %9 : vector<1xf32> to vector<1x1x1xf32>
    %11 = vector.extract %10[0, 0, 0] : f32 from vector<1x1x1xf32>
    %12 = math.log %11 : f32
    %13 = arith.addf %4, %12 : f32
    %14 = vector.broadcast %13 : f32 to vector<1x8xf32>
    %15 = arith.subf %0, %14 : vector<1x8xf32>
    %c0_2 = arith.constant 0 : index
    %c0_3 = arith.constant 0 : index
    %16 = vector.load %arg0[%c0_2, %c0_3] : memref<8x4xbf16, #tpu.memory_space<vmem>>, vector<8x4xbf16>
    %c0_4 = arith.constant 0 : index
    %c0_5 = arith.constant 0 : index
    %17 = vector.load %arg2[%c0_4, %c0_5] : memref<4x32xbf16, #tpu.memory_space<vmem>>, vector<4x32xbf16>
    %cst_6 = arith.constant dense<0.000000e+00> : vector<8x32xf32>
    %18 = tpu.matmul %16, %17, %cst_6 {dimension_numbers = #tpu.dot_dimension_numbers<[1], [0], [0], [1], [0, 0, 1, 1], [], []>} : vector<8x4xbf16>, vector<4x32xbf16>, vector<8x32xf32> -> vector<8x32xf32>
    %c0_7 = arith.constant 0 : index
    %c0_8 = arith.constant 0 : index
    %19 = vector.load %arg4[%c0_7, %c0_8] : memref<1x32xf32, #tpu.memory_space<vmem>>, vector<1x32xf32>
    %20 = vector.broadcast %19 : vector<1x32xf32> to vector<8x32xf32>
    %21 = arith.addf %18, %20 : vector<8x32xf32>
    %c0_9 = arith.constant 0 : index
    %c0_10 = arith.constant 0 : index
    %22 = vector.load %arg10[%c0_9, %c0_10] : memref<8x36xf32, #tpu.memory_space<vmem>>, vector<8x32xf32>
    tpu.vector_store %arg10[%c0_9, %c0_10], %21 {strides = array<i32>} : memref<8x36xf32, #tpu.memory_space<vmem>>, vector<8x32xf32>,
    %c0_11 = arith.constant 0 : index
    %c0_12 = arith.constant 0 : index
    %23 = vector.load %arg5[%c0_11, %c0_12] : memref<1x4xf32, #tpu.memory_space<vmem>>, vector<1x4xf32>
    %24 = vector.shape_cast %23 : vector<1x4xf32> to vector<1x4xf32>
    %25 = vector.broadcast %24 : vector<1x4xf32> to vector<8x4xf32>
    %c0_13 = arith.constant 0 : index
    %c32 = arith.constant 32 : index
    %26 = vector.load %arg10[%c0_13, %c32] : memref<8x36xf32, #tpu.memory_space<vmem>>, vector<8x4xf32>
    tpu.vector_store %arg10[%c0_13, %c32], %25 {strides = array<i32>} : memref<8x36xf32, #tpu.memory_space<vmem>>, vector<8x4xf32>,
    %c0_14 = arith.constant 0 : index
    %c0_15 = arith.constant 0 : index
    %27 = vector.load %arg3[%c0_14, %c0_15] : memref<36x36xbf16, #tpu.memory_space<vmem>>, vector<36x36xbf16>
    %c0_16 = arith.constant 0 : index
    %28 = memref.load %arg6[%c0_16] : memref<1xf32, #tpu.memory_space<smem>>
    %29 = vector.broadcast %28 : f32 to vector<1x1xf32>
    %30 = tpu.iota {dimensions = array<i32: 1>} : vector<1x8xi32>
    %cst_17 = arith.constant 0.000000e+00 : f32
    %31 = vector.broadcast %cst_17 : f32 to vector<1x8xf32>
    %cst_18 = arith.constant 0.000000e+00 : f32
    %32 = vector.broadcast %cst_18 : f32 to vector<1x8xf32>
    %c0_19 = arith.constant 0 : index
    %c0_20 = arith.constant 0 : index
    %33 = vector.load %arg10[%c0_19, %c0_20] : memref<8x36xf32, #tpu.memory_space<vmem>>, vector<1x36xf32>
    %34 = arith.negf %33 : vector<1x36xf32>
    %35 = math.exp %34 : vector<1x36xf32>
    %cst_21 = arith.constant 1.000000e+00 : f32
    %36 = vector.broadcast %cst_21 : f32 to vector<1x36xf32>
    %37 = arith.addf %36, %35 : vector<1x36xf32>
    %38 = arith.divf %36, %37 : vector<1x36xf32>
    %39 = vector.extract_strided_slice %38 {offsets = [0, 32], sizes = [1, 1], strides = [1, 1]} : vector<1x36xf32> to vector<1x1xf32>
    %40 = vector.extract_strided_slice %38 {offsets = [0, 33], sizes = [1, 1], strides = [1, 1]} : vector<1x36xf32> to vector<1x1xf32>
    %41 = vector.extract_strided_slice %38 {offsets = [0, 34], sizes = [1, 1], strides = [1, 1]} : vector<1x36xf32> to vector<1x1xf32>
    %42 = vector.extract_strided_slice %38 {offsets = [0, 35], sizes = [1, 1], strides = [1, 1]} : vector<1x36xf32> to vector<1x1xf32>
    %cst_22 = arith.constant 1.000000e+00 : f32
    %43 = vector.broadcast %cst_22 : f32 to vector<1x1xf32>
    %44 = arith.subf %43, %42 : vector<1x1xf32>
    %45 = arith.mulf %29, %44 : vector<1x1xf32>
    %46 = arith.mulf %29, %42 : vector<1x1xf32>
    %cst_23 = arith.constant 1.000000e+00 : f32
    %47 = vector.broadcast %cst_23 : f32 to vector<1x1xf32>
    %48 = arith.subf %47, %29 : vector<1x1xf32>
    %49 = arith.mulf %48, %41 : vector<1x1xf32>
    %50 = arith.addf %45, %49 : vector<1x1xf32>
    %cst_24 = arith.constant 1.000000e+00 : f32
    %51 = vector.broadcast %cst_24 : f32 to vector<1x1xf32>
    %52 = arith.subf %51, %29 : vector<1x1xf32>
    %cst_25 = arith.constant 1.000000e+00 : f32
    %53 = vector.broadcast %cst_25 : f32 to vector<1x1xf32>
    %54 = arith.subf %53, %41 : vector<1x1xf32>
    %55 = arith.mulf %52, %54 : vector<1x1xf32>
    %56 = arith.addf %46, %55 : vector<1x1xf32>
    %57 = arith.divf %45, %50 : vector<1x1xf32>
    %58 = arith.divf %46, %56 : vector<1x1xf32>
    %59 = arith.mulf %57, %50 : vector<1x1xf32>
    %cst_26 = arith.constant 1.000000e+00 : f32
    %60 = vector.broadcast %cst_26 : f32 to vector<1x1xf32>
    %61 = arith.subf %60, %50 : vector<1x1xf32>
    %62 = arith.mulf %58, %61 : vector<1x1xf32>
    %63 = arith.addf %59, %62 : vector<1x1xf32>
    %cst_27 = arith.constant 1.000000e+00 : f32
    %64 = vector.broadcast %cst_27 : f32 to vector<1x1xf32>
    %65 = arith.subf %64, %40 : vector<1x1xf32>
    %66 = arith.mulf %63, %65 : vector<1x1xf32>
    %cst_28 = arith.constant 1.000000e+00 : f32
    %67 = vector.broadcast %cst_28 : f32 to vector<1x1xf32>
    %68 = arith.subf %67, %63 : vector<1x1xf32>
    %69 = arith.mulf %68, %39 : vector<1x1xf32>
    %70 = arith.addf %66, %69 : vector<1x1xf32>
    %c0_i32 = arith.constant 0 : i32
    %71 = vector.broadcast %c0_i32 : i32 to vector<1x8xi32>
    %72 = arith.cmpi eq, %30, %71 : vector<1x8xi32>
    %73 = vector.shape_cast %50 : vector<1x1xf32> to vector<1x1xf32>
    %74 = vector.broadcast %73 : vector<1x1xf32> to vector<1x8xf32>
    %75 = arith.select %72, %74, %32 : vector<1x8xi1>, vector<1x8xf32>
    %c0_i32_29 = arith.constant 0 : i32
    %76 = vector.broadcast %c0_i32_29 : i32 to vector<1x8xi32>
    %77 = arith.cmpi eq, %30, %76 : vector<1x8xi32>
    %78 = vector.shape_cast %70 : vector<1x1xf32> to vector<1x1xf32>
    %79 = vector.broadcast %78 : vector<1x1xf32> to vector<1x8xf32>
    %80 = arith.select %77, %79, %31 : vector<1x8xi1>, vector<1x8xf32>
    %81 = arith.truncf %38 : vector<1x36xf32> to vector<1x36xbf16>
    %cst_30 = arith.constant dense<0.000000e+00> : vector<1x36xf32>
    %82 = tpu.matmul %81, %27, %cst_30 {dimension_numbers = #tpu.dot_dimension_numbers<[1], [0], [0], [1], [0, 0, 1, 1], [], []>} : vector<1x36xbf16>, vector<36x36xbf16>, vector<1x36xf32> -> vector<1x36xf32>
    %c1 = arith.constant 1 : index
    %c0_31 = arith.constant 0 : index
    %83 = vector.load %arg10[%c1, %c0_31] : memref<8x36xf32, #tpu.memory_space<vmem>>, vector<1x36xf32>
    %84 = arith.addf %82, %83 : vector<1x36xf32>
    %85 = arith.negf %84 : vector<1x36xf32>
    %86 = math.exp %85 : vector<1x36xf32>
    %cst_32 = arith.constant 1.000000e+00 : f32
    %87 = vector.broadcast %cst_32 : f32 to vector<1x36xf32>
    %88 = arith.addf %87, %86 : vector<1x36xf32>
    %89 = arith.divf %87, %88 : vector<1x36xf32>
    %90 = vector.extract_strided_slice %89 {offsets = [0, 32], sizes = [1, 1], strides = [1, 1]} : vector<1x36xf32> to vector<1x1xf32>
    %91 = vector.extract_strided_slice %89 {offsets = [0, 33], sizes = [1, 1], strides = [1, 1]} : vector<1x36xf32> to vector<1x1xf32>
    %92 = vector.extract_strided_slice %89 {offsets = [0, 34], sizes = [1, 1], strides = [1, 1]} : vector<1x36xf32> to vector<1x1xf32>
    %93 = vector.extract_strided_slice %89 {offsets = [0, 35], sizes = [1, 1], strides = [1, 1]} : vector<1x36xf32> to vector<1x1xf32>
    %cst_33 = arith.constant 1.000000e+00 : f32
    %94 = vector.broadcast %cst_33 : f32 to vector<1x1xf32>
    %95 = arith.subf %94, %93 : vector<1x1xf32>
    %96 = arith.mulf %50, %95 : vector<1x1xf32>
    %97 = arith.mulf %50, %93 : vector<1x1xf32>
    %cst_34 = arith.constant 1.000000e+00 : f32
    %98 = vector.broadcast %cst_34 : f32 to vector<1x1xf32>
    %99 = arith.subf %98, %50 : vector<1x1xf32>
    %100 = arith.mulf %99, %92 : vector<1x1xf32>
    %101 = arith.addf %96, %100 : vector<1x1xf32>
    %cst_35 = arith.constant 1.000000e+00 : f32
    %102 = vector.broadcast %cst_35 : f32 to vector<1x1xf32>
    %103 = arith.subf %102, %50 : vector<1x1xf32>
    %cst_36 = arith.constant 1.000000e+00 : f32
    %104 = vector.broadcast %cst_36 : f32 to vector<1x1xf32>
    %105 = arith.subf %104, %92 : vector<1x1xf32>
    %106 = arith.mulf %103, %105 : vector<1x1xf32>
    %107 = arith.addf %97, %106 : vector<1x1xf32>
    %108 = arith.divf %96, %101 : vector<1x1xf32>
    %109 = arith.divf %97, %107 : vector<1x1xf32>
    %110 = arith.mulf %108, %101 : vector<1x1xf32>
    %cst_37 = arith.constant 1.000000e+00 : f32
    %111 = vector.broadcast %cst_37 : f32 to vector<1x1xf32>
    %112 = arith.subf %111, %101 : vector<1x1xf32>
    %113 = arith.mulf %109, %112 : vector<1x1xf32>
    %114 = arith.addf %110, %113 : vector<1x1xf32>
    %cst_38 = arith.constant 1.000000e+00 : f32
    %115 = vector.broadcast %cst_38 : f32 to vector<1x1xf32>
    %116 = arith.subf %115, %91 : vector<1x1xf32>
    %117 = arith.mulf %114, %116 : vector<1x1xf32>
    %cst_39 = arith.constant 1.000000e+00 : f32
    %118 = vector.broadcast %cst_39 : f32 to vector<1x1xf32>
    %119 = arith.subf %118, %114 : vector<1x1xf32>
    %120 = arith.mulf %119, %90 : vector<1x1xf32>
    %121 = arith.addf %117, %120 : vector<1x1xf32>
    %c1_i32 = arith.constant 1 : i32
    %122 = vector.broadcast %c1_i32 : i32 to vector<1x8xi32>
    %123 = arith.cmpi eq, %30, %122 : vector<1x8xi32>
    %124 = vector.shape_cast %101 : vector<1x1xf32> to vector<1x1xf32>
    %125 = vector.broadcast %124 : vector<1x1xf32> to vector<1x8xf32>
    %126 = arith.select %123, %125, %75 : vector<1x8xi1>, vector<1x8xf32>
    %c1_i32_40 = arith.constant 1 : i32
    %127 = vector.broadcast %c1_i32_40 : i32 to vector<1x8xi32>
    %128 = arith.cmpi eq, %30, %127 : vector<1x8xi32>
    %129 = vector.shape_cast %121 : vector<1x1xf32> to vector<1x1xf32>
    %130 = vector.broadcast %129 : vector<1x1xf32> to vector<1x8xf32>
    %131 = arith.select %128, %130, %80 : vector<1x8xi1>, vector<1x8xf32>
    %132 = arith.truncf %89 : vector<1x36xf32> to vector<1x36xbf16>
    %cst_41 = arith.constant dense<0.000000e+00> : vector<1x36xf32>
    %133 = tpu.matmul %132, %27, %cst_41 {dimension_numbers = #tpu.dot_dimension_numbers<[1], [0], [0], [1], [0, 0, 1, 1], [], []>} : vector<1x36xbf16>, vector<36x36xbf16>, vector<1x36xf32> -> vector<1x36xf32>
    %c2 = arith.constant 2 : index
    %c0_42 = arith.constant 0 : index
    %134 = vector.load %arg10[%c2, %c0_42] : memref<8x36xf32, #tpu.memory_space<vmem>>, vector<1x36xf32>
    %135 = arith.addf %133, %134 : vector<1x36xf32>
    %136 = arith.negf %135 : vector<1x36xf32>
    %137 = math.exp %136 : vector<1x36xf32>
    %cst_43 = arith.constant 1.000000e+00 : f32
    %138 = vector.broadcast %cst_43 : f32 to vector<1x36xf32>
    %139 = arith.addf %138, %137 : vector<1x36xf32>
    %140 = arith.divf %138, %139 : vector<1x36xf32>
    %141 = vector.extract_strided_slice %140 {offsets = [0, 32], sizes = [1, 1], strides = [1, 1]} : vector<1x36xf32> to vector<1x1xf32>
    %142 = vector.extract_strided_slice %140 {offsets = [0, 33], sizes = [1, 1], strides = [1, 1]} : vector<1x36xf32> to vector<1x1xf32>
    %143 = vector.extract_strided_slice %140 {offsets = [0, 34], sizes = [1, 1], strides = [1, 1]} : vector<1x36xf32> to vector<1x1xf32>
    %144 = vector.extract_strided_slice %140 {offsets = [0, 35], sizes = [1, 1], strides = [1, 1]} : vector<1x36xf32> to vector<1x1xf32>
    %cst_44 = arith.constant 1.000000e+00 : f32
    %145 = vector.broadcast %cst_44 : f32 to vector<1x1xf32>
    %146 = arith.subf %145, %144 : vector<1x1xf32>
    %147 = arith.mulf %101, %146 : vector<1x1xf32>
    %148 = arith.mulf %101, %144 : vector<1x1xf32>
    %cst_45 = arith.constant 1.000000e+00 : f32
    %149 = vector.broadcast %cst_45 : f32 to vector<1x1xf32>
    %150 = arith.subf %149, %101 : vector<1x1xf32>
    %151 = arith.mulf %150, %143 : vector<1x1xf32>
    %152 = arith.addf %147, %151 : vector<1x1xf32>
    %cst_46 = arith.constant 1.000000e+00 : f32
    %153 = vector.broadcast %cst_46 : f32 to vector<1x1xf32>
    %154 = arith.subf %153, %101 : vector<1x1xf32>
    %cst_47 = arith.constant 1.000000e+00 : f32
    %155 = vector.broadcast %cst_47 : f32 to vector<1x1xf32>
    %156 = arith.subf %155, %143 : vector<1x1xf32>
    %157 = arith.mulf %154, %156 : vector<1x1xf32>
    %158 = arith.addf %148, %157 : vector<1x1xf32>
    %159 = arith.divf %147, %152 : vector<1x1xf32>
    %160 = arith.divf %148, %158 : vector<1x1xf32>
    %161 = arith.mulf %159, %152 : vector<1x1xf32>
    %cst_48 = arith.constant 1.000000e+00 : f32
    %162 = vector.broadcast %cst_48 : f32 to vector<1x1xf32>
    %163 = arith.subf %162, %152 : vector<1x1xf32>
    %164 = arith.mulf %160, %163 : vector<1x1xf32>
    %165 = arith.addf %161, %164 : vector<1x1xf32>
    %cst_49 = arith.constant 1.000000e+00 : f32
    %166 = vector.broadcast %cst_49 : f32 to vector<1x1xf32>
    %167 = arith.subf %166, %142 : vector<1x1xf32>
    %168 = arith.mulf %165, %167 : vector<1x1xf32>
    %cst_50 = arith.constant 1.000000e+00 : f32
    %169 = vector.broadcast %cst_50 : f32 to vector<1x1xf32>
    %170 = arith.subf %169, %165 : vector<1x1xf32>
    %171 = arith.mulf %170, %141 : vector<1x1xf32>
    %172 = arith.addf %168, %171 : vector<1x1xf32>
    %c2_i32 = arith.constant 2 : i32
    %173 = vector.broadcast %c2_i32 : i32 to vector<1x8xi32>
    %174 = arith.cmpi eq, %30, %173 : vector<1x8xi32>
    %175 = vector.shape_cast %152 : vector<1x1xf32> to vector<1x1xf32>
    %176 = vector.broadcast %175 : vector<1x1xf32> to vector<1x8xf32>
    %177 = arith.select %174, %176, %126 : vector<1x8xi1>, vector<1x8xf32>
    %c2_i32_51 = arith.constant 2 : i32
    %178 = vector.broadcast %c2_i32_51 : i32 to vector<1x8xi32>
    %179 = arith.cmpi eq, %30, %178 : vector<1x8xi32>
    %180 = vector.shape_cast %172 : vector<1x1xf32> to vector<1x1xf32>
    %181 = vector.broadcast %180 : vector<1x1xf32> to vector<1x8xf32>
    %182 = arith.select %179, %181, %131 : vector<1x8xi1>, vector<1x8xf32>
    %183 = arith.truncf %140 : vector<1x36xf32> to vector<1x36xbf16>
    %cst_52 = arith.constant dense<0.000000e+00> : vector<1x36xf32>
    %184 = tpu.matmul %183, %27, %cst_52 {dimension_numbers = #tpu.dot_dimension_numbers<[1], [0], [0], [1], [0, 0, 1, 1], [], []>} : vector<1x36xbf16>, vector<36x36xbf16>, vector<1x36xf32> -> vector<1x36xf32>
    %c3 = arith.constant 3 : index
    %c0_53 = arith.constant 0 : index
    %185 = vector.load %arg10[%c3, %c0_53] : memref<8x36xf32, #tpu.memory_space<vmem>>, vector<1x36xf32>
    %186 = arith.addf %184, %185 : vector<1x36xf32>
    %187 = arith.negf %186 : vector<1x36xf32>
    %188 = math.exp %187 : vector<1x36xf32>
    %cst_54 = arith.constant 1.000000e+00 : f32
    %189 = vector.broadcast %cst_54 : f32 to vector<1x36xf32>
    %190 = arith.addf %189, %188 : vector<1x36xf32>
    %191 = arith.divf %189, %190 : vector<1x36xf32>
    %192 = vector.extract_strided_slice %191 {offsets = [0, 32], sizes = [1, 1], strides = [1, 1]} : vector<1x36xf32> to vector<1x1xf32>
    %193 = vector.extract_strided_slice %191 {offsets = [0, 33], sizes = [1, 1], strides = [1, 1]} : vector<1x36xf32> to vector<1x1xf32>
    %194 = vector.extract_strided_slice %191 {offsets = [0, 34], sizes = [1, 1], strides = [1, 1]} : vector<1x36xf32> to vector<1x1xf32>
    %195 = vector.extract_strided_slice %191 {offsets = [0, 35], sizes = [1, 1], strides = [1, 1]} : vector<1x36xf32> to vector<1x1xf32>
    %cst_55 = arith.constant 1.000000e+00 : f32
    %196 = vector.broadcast %cst_55 : f32 to vector<1x1xf32>
    %197 = arith.subf %196, %195 : vector<1x1xf32>
    %198 = arith.mulf %152, %197 : vector<1x1xf32>
    %199 = arith.mulf %152, %195 : vector<1x1xf32>
    %cst_56 = arith.constant 1.000000e+00 : f32
    %200 = vector.broadcast %cst_56 : f32 to vector<1x1xf32>
    %201 = arith.subf %200, %152 : vector<1x1xf32>
    %202 = arith.mulf %201, %194 : vector<1x1xf32>
    %203 = arith.addf %198, %202 : vector<1x1xf32>
    %cst_57 = arith.constant 1.000000e+00 : f32
    %204 = vector.broadcast %cst_57 : f32 to vector<1x1xf32>
    %205 = arith.subf %204, %152 : vector<1x1xf32>
    %cst_58 = arith.constant 1.000000e+00 : f32
    %206 = vector.broadcast %cst_58 : f32 to vector<1x1xf32>
    %207 = arith.subf %206, %194 : vector<1x1xf32>
    %208 = arith.mulf %205, %207 : vector<1x1xf32>
    %209 = arith.addf %199, %208 : vector<1x1xf32>
    %210 = arith.divf %198, %203 : vector<1x1xf32>
    %211 = arith.divf %199, %209 : vector<1x1xf32>
    %212 = arith.mulf %210, %203 : vector<1x1xf32>
    %cst_59 = arith.constant 1.000000e+00 : f32
    %213 = vector.broadcast %cst_59 : f32 to vector<1x1xf32>
    %214 = arith.subf %213, %203 : vector<1x1xf32>
    %215 = arith.mulf %211, %214 : vector<1x1xf32>
    %216 = arith.addf %212, %215 : vector<1x1xf32>
    %cst_60 = arith.constant 1.000000e+00 : f32
    %217 = vector.broadcast %cst_60 : f32 to vector<1x1xf32>
    %218 = arith.subf %217, %193 : vector<1x1xf32>
    %219 = arith.mulf %216, %218 : vector<1x1xf32>
    %cst_61 = arith.constant 1.000000e+00 : f32
    %220 = vector.broadcast %cst_61 : f32 to vector<1x1xf32>
    %221 = arith.subf %220, %216 : vector<1x1xf32>
    %222 = arith.mulf %221, %192 : vector<1x1xf32>
    %223 = arith.addf %219, %222 : vector<1x1xf32>
    %c3_i32 = arith.constant 3 : i32
    %224 = vector.broadcast %c3_i32 : i32 to vector<1x8xi32>
    %225 = arith.cmpi eq, %30, %224 : vector<1x8xi32>
    %226 = vector.shape_cast %203 : vector<1x1xf32> to vector<1x1xf32>
    %227 = vector.broadcast %226 : vector<1x1xf32> to vector<1x8xf32>
    %228 = arith.select %225, %227, %177 : vector<1x8xi1>, vector<1x8xf32>
    %c3_i32_62 = arith.constant 3 : i32
    %229 = vector.broadcast %c3_i32_62 : i32 to vector<1x8xi32>
    %230 = arith.cmpi eq, %30, %229 : vector<1x8xi32>
    %231 = vector.shape_cast %223 : vector<1x1xf32> to vector<1x1xf32>
    %232 = vector.broadcast %231 : vector<1x1xf32> to vector<1x8xf32>
    %233 = arith.select %230, %232, %182 : vector<1x8xi1>, vector<1x8xf32>
    %234 = arith.truncf %191 : vector<1x36xf32> to vector<1x36xbf16>
    %cst_63 = arith.constant dense<0.000000e+00> : vector<1x36xf32>
    %235 = tpu.matmul %234, %27, %cst_63 {dimension_numbers = #tpu.dot_dimension_numbers<[1], [0], [0], [1], [0, 0, 1, 1], [], []>} : vector<1x36xbf16>, vector<36x36xbf16>, vector<1x36xf32> -> vector<1x36xf32>
    %c4 = arith.constant 4 : index
    %c0_64 = arith.constant 0 : index
    %236 = vector.load %arg10[%c4, %c0_64] : memref<8x36xf32, #tpu.memory_space<vmem>>, vector<1x36xf32>
    %237 = arith.addf %235, %236 : vector<1x36xf32>
    %238 = arith.negf %237 : vector<1x36xf32>
    %239 = math.exp %238 : vector<1x36xf32>
    %cst_65 = arith.constant 1.000000e+00 : f32
    %240 = vector.broadcast %cst_65 : f32 to vector<1x36xf32>
    %241 = arith.addf %240, %239 : vector<1x36xf32>
    %242 = arith.divf %240, %241 : vector<1x36xf32>
    %243 = vector.extract_strided_slice %242 {offsets = [0, 32], sizes = [1, 1], strides = [1, 1]} : vector<1x36xf32> to vector<1x1xf32>
    %244 = vector.extract_strided_slice %242 {offsets = [0, 33], sizes = [1, 1], strides = [1, 1]} : vector<1x36xf32> to vector<1x1xf32>
    %245 = vector.extract_strided_slice %242 {offsets = [0, 34], sizes = [1, 1], strides = [1, 1]} : vector<1x36xf32> to vector<1x1xf32>
    %246 = vector.extract_strided_slice %242 {offsets = [0, 35], sizes = [1, 1], strides = [1, 1]} : vector<1x36xf32> to vector<1x1xf32>
    %cst_66 = arith.constant 1.000000e+00 : f32
    %247 = vector.broadcast %cst_66 : f32 to vector<1x1xf32>
    %248 = arith.subf %247, %246 : vector<1x1xf32>
    %249 = arith.mulf %203, %248 : vector<1x1xf32>
    %250 = arith.mulf %203, %246 : vector<1x1xf32>
    %cst_67 = arith.constant 1.000000e+00 : f32
    %251 = vector.broadcast %cst_67 : f32 to vector<1x1xf32>
    %252 = arith.subf %251, %203 : vector<1x1xf32>
    %253 = arith.mulf %252, %245 : vector<1x1xf32>
    %254 = arith.addf %249, %253 : vector<1x1xf32>
    %cst_68 = arith.constant 1.000000e+00 : f32
    %255 = vector.broadcast %cst_68 : f32 to vector<1x1xf32>
    %256 = arith.subf %255, %203 : vector<1x1xf32>
    %cst_69 = arith.constant 1.000000e+00 : f32
    %257 = vector.broadcast %cst_69 : f32 to vector<1x1xf32>
    %258 = arith.subf %257, %245 : vector<1x1xf32>
    %259 = arith.mulf %256, %258 : vector<1x1xf32>
    %260 = arith.addf %250, %259 : vector<1x1xf32>
    %261 = arith.divf %249, %254 : vector<1x1xf32>
    %262 = arith.divf %250, %260 : vector<1x1xf32>
    %263 = arith.mulf %261, %254 : vector<1x1xf32>
    %cst_70 = arith.constant 1.000000e+00 : f32
    %264 = vector.broadcast %cst_70 : f32 to vector<1x1xf32>
    %265 = arith.subf %264, %254 : vector<1x1xf32>
    %266 = arith.mulf %262, %265 : vector<1x1xf32>
    %267 = arith.addf %263, %266 : vector<1x1xf32>
    %cst_71 = arith.constant 1.000000e+00 : f32
    %268 = vector.broadcast %cst_71 : f32 to vector<1x1xf32>
    %269 = arith.subf %268, %244 : vector<1x1xf32>
    %270 = arith.mulf %267, %269 : vector<1x1xf32>
    %cst_72 = arith.constant 1.000000e+00 : f32
    %271 = vector.broadcast %cst_72 : f32 to vector<1x1xf32>
    %272 = arith.subf %271, %267 : vector<1x1xf32>
    %273 = arith.mulf %272, %243 : vector<1x1xf32>
    %274 = arith.addf %270, %273 : vector<1x1xf32>
    %c4_i32 = arith.constant 4 : i32
    %275 = vector.broadcast %c4_i32 : i32 to vector<1x8xi32>
    %276 = arith.cmpi eq, %30, %275 : vector<1x8xi32>
    %277 = vector.shape_cast %254 : vector<1x1xf32> to vector<1x1xf32>
    %278 = vector.broadcast %277 : vector<1x1xf32> to vector<1x8xf32>
    %279 = arith.select %276, %278, %228 : vector<1x8xi1>, vector<1x8xf32>
    %c4_i32_73 = arith.constant 4 : i32
    %280 = vector.broadcast %c4_i32_73 : i32 to vector<1x8xi32>
    %281 = arith.cmpi eq, %30, %280 : vector<1x8xi32>
    %282 = vector.shape_cast %274 : vector<1x1xf32> to vector<1x1xf32>
    %283 = vector.broadcast %282 : vector<1x1xf32> to vector<1x8xf32>
    %284 = arith.select %281, %283, %233 : vector<1x8xi1>, vector<1x8xf32>
    %285 = arith.truncf %242 : vector<1x36xf32> to vector<1x36xbf16>
    %cst_74 = arith.constant dense<0.000000e+00> : vector<1x36xf32>
    %286 = tpu.matmul %285, %27, %cst_74 {dimension_numbers = #tpu.dot_dimension_numbers<[1], [0], [0], [1], [0, 0, 1, 1], [], []>} : vector<1x36xbf16>, vector<36x36xbf16>, vector<1x36xf32> -> vector<1x36xf32>
    %c5 = arith.constant 5 : index
    %c0_75 = arith.constant 0 : index
    %287 = vector.load %arg10[%c5, %c0_75] : memref<8x36xf32, #tpu.memory_space<vmem>>, vector<1x36xf32>
    %288 = arith.addf %286, %287 : vector<1x36xf32>
    %289 = arith.negf %288 : vector<1x36xf32>
    %290 = math.exp %289 : vector<1x36xf32>
    %cst_76 = arith.constant 1.000000e+00 : f32
    %291 = vector.broadcast %cst_76 : f32 to vector<1x36xf32>
    %292 = arith.addf %291, %290 : vector<1x36xf32>
    %293 = arith.divf %291, %292 : vector<1x36xf32>
    %294 = vector.extract_strided_slice %293 {offsets = [0, 32], sizes = [1, 1], strides = [1, 1]} : vector<1x36xf32> to vector<1x1xf32>
    %295 = vector.extract_strided_slice %293 {offsets = [0, 33], sizes = [1, 1], strides = [1, 1]} : vector<1x36xf32> to vector<1x1xf32>
    %296 = vector.extract_strided_slice %293 {offsets = [0, 34], sizes = [1, 1], strides = [1, 1]} : vector<1x36xf32> to vector<1x1xf32>
    %297 = vector.extract_strided_slice %293 {offsets = [0, 35], sizes = [1, 1], strides = [1, 1]} : vector<1x36xf32> to vector<1x1xf32>
    %cst_77 = arith.constant 1.000000e+00 : f32
    %298 = vector.broadcast %cst_77 : f32 to vector<1x1xf32>
    %299 = arith.subf %298, %297 : vector<1x1xf32>
    %300 = arith.mulf %254, %299 : vector<1x1xf32>
    %301 = arith.mulf %254, %297 : vector<1x1xf32>
    %cst_78 = arith.constant 1.000000e+00 : f32
    %302 = vector.broadcast %cst_78 : f32 to vector<1x1xf32>
    %303 = arith.subf %302, %254 : vector<1x1xf32>
    %304 = arith.mulf %303, %296 : vector<1x1xf32>
    %305 = arith.addf %300, %304 : vector<1x1xf32>
    %cst_79 = arith.constant 1.000000e+00 : f32
    %306 = vector.broadcast %cst_79 : f32 to vector<1x1xf32>
    %307 = arith.subf %306, %254 : vector<1x1xf32>
    %cst_80 = arith.constant 1.000000e+00 : f32
    %308 = vector.broadcast %cst_80 : f32 to vector<1x1xf32>
    %309 = arith.subf %308, %296 : vector<1x1xf32>
    %310 = arith.mulf %307, %309 : vector<1x1xf32>
    %311 = arith.addf %301, %310 : vector<1x1xf32>
    %312 = arith.divf %300, %305 : vector<1x1xf32>
    %313 = arith.divf %301, %311 : vector<1x1xf32>
    %314 = arith.mulf %312, %305 : vector<1x1xf32>
    %cst_81 = arith.constant 1.000000e+00 : f32
    %315 = vector.broadcast %cst_81 : f32 to vector<1x1xf32>
    %316 = arith.subf %315, %305 : vector<1x1xf32>
    %317 = arith.mulf %313, %316 : vector<1x1xf32>
    %318 = arith.addf %314, %317 : vector<1x1xf32>
    %cst_82 = arith.constant 1.000000e+00 : f32
    %319 = vector.broadcast %cst_82 : f32 to vector<1x1xf32>
    %320 = arith.subf %319, %295 : vector<1x1xf32>
    %321 = arith.mulf %318, %320 : vector<1x1xf32>
    %cst_83 = arith.constant 1.000000e+00 : f32
    %322 = vector.broadcast %cst_83 : f32 to vector<1x1xf32>
    %323 = arith.subf %322, %318 : vector<1x1xf32>
    %324 = arith.mulf %323, %294 : vector<1x1xf32>
    %325 = arith.addf %321, %324 : vector<1x1xf32>
    %c5_i32 = arith.constant 5 : i32
    %326 = vector.broadcast %c5_i32 : i32 to vector<1x8xi32>
    %327 = arith.cmpi eq, %30, %326 : vector<1x8xi32>
    %328 = vector.shape_cast %305 : vector<1x1xf32> to vector<1x1xf32>
    %329 = vector.broadcast %328 : vector<1x1xf32> to vector<1x8xf32>
    %330 = arith.select %327, %329, %279 : vector<1x8xi1>, vector<1x8xf32>
    %c5_i32_84 = arith.constant 5 : i32
    %331 = vector.broadcast %c5_i32_84 : i32 to vector<1x8xi32>
    %332 = arith.cmpi eq, %30, %331 : vector<1x8xi32>
    %333 = vector.shape_cast %325 : vector<1x1xf32> to vector<1x1xf32>
    %334 = vector.broadcast %333 : vector<1x1xf32> to vector<1x8xf32>
    %335 = arith.select %332, %334, %284 : vector<1x8xi1>, vector<1x8xf32>
    %336 = arith.truncf %293 : vector<1x36xf32> to vector<1x36xbf16>
    %cst_85 = arith.constant dense<0.000000e+00> : vector<1x36xf32>
    %337 = tpu.matmul %336, %27, %cst_85 {dimension_numbers = #tpu.dot_dimension_numbers<[1], [0], [0], [1], [0, 0, 1, 1], [], []>} : vector<1x36xbf16>, vector<36x36xbf16>, vector<1x36xf32> -> vector<1x36xf32>
    %c6 = arith.constant 6 : index
    %c0_86 = arith.constant 0 : index
    %338 = vector.load %arg10[%c6, %c0_86] : memref<8x36xf32, #tpu.memory_space<vmem>>, vector<1x36xf32>
    %339 = arith.addf %337, %338 : vector<1x36xf32>
    %340 = arith.negf %339 : vector<1x36xf32>
    %341 = math.exp %340 : vector<1x36xf32>
    %cst_87 = arith.constant 1.000000e+00 : f32
    %342 = vector.broadcast %cst_87 : f32 to vector<1x36xf32>
    %343 = arith.addf %342, %341 : vector<1x36xf32>
    %344 = arith.divf %342, %343 : vector<1x36xf32>
    %345 = vector.extract_strided_slice %344 {offsets = [0, 32], sizes = [1, 1], strides = [1, 1]} : vector<1x36xf32> to vector<1x1xf32>
    %346 = vector.extract_strided_slice %344 {offsets = [0, 33], sizes = [1, 1], strides = [1, 1]} : vector<1x36xf32> to vector<1x1xf32>
    %347 = vector.extract_strided_slice %344 {offsets = [0, 34], sizes = [1, 1], strides = [1, 1]} : vector<1x36xf32> to vector<1x1xf32>
    %348 = vector.extract_strided_slice %344 {offsets = [0, 35], sizes = [1, 1], strides = [1, 1]} : vector<1x36xf32> to vector<1x1xf32>
    %cst_88 = arith.constant 1.000000e+00 : f32
    %349 = vector.broadcast %cst_88 : f32 to vector<1x1xf32>
    %350 = arith.subf %349, %348 : vector<1x1xf32>
    %351 = arith.mulf %305, %350 : vector<1x1xf32>
    %352 = arith.mulf %305, %348 : vector<1x1xf32>
    %cst_89 = arith.constant 1.000000e+00 : f32
    %353 = vector.broadcast %cst_89 : f32 to vector<1x1xf32>
    %354 = arith.subf %353, %305 : vector<1x1xf32>
    %355 = arith.mulf %354, %347 : vector<1x1xf32>
    %356 = arith.addf %351, %355 : vector<1x1xf32>
    %cst_90 = arith.constant 1.000000e+00 : f32
    %357 = vector.broadcast %cst_90 : f32 to vector<1x1xf32>
    %358 = arith.subf %357, %305 : vector<1x1xf32>
    %cst_91 = arith.constant 1.000000e+00 : f32
    %359 = vector.broadcast %cst_91 : f32 to vector<1x1xf32>
    %360 = arith.subf %359, %347 : vector<1x1xf32>
    %361 = arith.mulf %358, %360 : vector<1x1xf32>
    %362 = arith.addf %352, %361 : vector<1x1xf32>
    %363 = arith.divf %351, %356 : vector<1x1xf32>
    %364 = arith.divf %352, %362 : vector<1x1xf32>
    %365 = arith.mulf %363, %356 : vector<1x1xf32>
    %cst_92 = arith.constant 1.000000e+00 : f32
    %366 = vector.broadcast %cst_92 : f32 to vector<1x1xf32>
    %367 = arith.subf %366, %356 : vector<1x1xf32>
    %368 = arith.mulf %364, %367 : vector<1x1xf32>
    %369 = arith.addf %365, %368 : vector<1x1xf32>
    %cst_93 = arith.constant 1.000000e+00 : f32
    %370 = vector.broadcast %cst_93 : f32 to vector<1x1xf32>
    %371 = arith.subf %370, %346 : vector<1x1xf32>
    %372 = arith.mulf %369, %371 : vector<1x1xf32>
    %cst_94 = arith.constant 1.000000e+00 : f32
    %373 = vector.broadcast %cst_94 : f32 to vector<1x1xf32>
    %374 = arith.subf %373, %369 : vector<1x1xf32>
    %375 = arith.mulf %374, %345 : vector<1x1xf32>
    %376 = arith.addf %372, %375 : vector<1x1xf32>
    %c6_i32 = arith.constant 6 : i32
    %377 = vector.broadcast %c6_i32 : i32 to vector<1x8xi32>
    %378 = arith.cmpi eq, %30, %377 : vector<1x8xi32>
    %379 = vector.shape_cast %356 : vector<1x1xf32> to vector<1x1xf32>
    %380 = vector.broadcast %379 : vector<1x1xf32> to vector<1x8xf32>
    %381 = arith.select %378, %380, %330 : vector<1x8xi1>, vector<1x8xf32>
    %c6_i32_95 = arith.constant 6 : i32
    %382 = vector.broadcast %c6_i32_95 : i32 to vector<1x8xi32>
    %383 = arith.cmpi eq, %30, %382 : vector<1x8xi32>
    %384 = vector.shape_cast %376 : vector<1x1xf32> to vector<1x1xf32>
    %385 = vector.broadcast %384 : vector<1x1xf32> to vector<1x8xf32>
    %386 = arith.select %383, %385, %335 : vector<1x8xi1>, vector<1x8xf32>
    %387 = arith.truncf %344 : vector<1x36xf32> to vector<1x36xbf16>
    %cst_96 = arith.constant dense<0.000000e+00> : vector<1x36xf32>
    %388 = tpu.matmul %387, %27, %cst_96 {dimension_numbers = #tpu.dot_dimension_numbers<[1], [0], [0], [1], [0, 0, 1, 1], [], []>} : vector<1x36xbf16>, vector<36x36xbf16>, vector<1x36xf32> -> vector<1x36xf32>
    %c7 = arith.constant 7 : index
    %c0_97 = arith.constant 0 : index
    %389 = vector.load %arg10[%c7, %c0_97] : memref<8x36xf32, #tpu.memory_space<vmem>>, vector<1x36xf32>
    %390 = arith.addf %388, %389 : vector<1x36xf32>
    %391 = arith.negf %390 : vector<1x36xf32>
    %392 = math.exp %391 : vector<1x36xf32>
    %cst_98 = arith.constant 1.000000e+00 : f32
    %393 = vector.broadcast %cst_98 : f32 to vector<1x36xf32>
    %394 = arith.addf %393, %392 : vector<1x36xf32>
    %395 = arith.divf %393, %394 : vector<1x36xf32>
    %396 = vector.extract_strided_slice %395 {offsets = [0, 32], sizes = [1, 1], strides = [1, 1]} : vector<1x36xf32> to vector<1x1xf32>
    %397 = vector.extract_strided_slice %395 {offsets = [0, 33], sizes = [1, 1], strides = [1, 1]} : vector<1x36xf32> to vector<1x1xf32>
    %398 = vector.extract_strided_slice %395 {offsets = [0, 34], sizes = [1, 1], strides = [1, 1]} : vector<1x36xf32> to vector<1x1xf32>
    %399 = vector.extract_strided_slice %395 {offsets = [0, 35], sizes = [1, 1], strides = [1, 1]} : vector<1x36xf32> to vector<1x1xf32>
    %cst_99 = arith.constant 1.000000e+00 : f32
    %400 = vector.broadcast %cst_99 : f32 to vector<1x1xf32>
    %401 = arith.subf %400, %399 : vector<1x1xf32>
    %402 = arith.mulf %356, %401 : vector<1x1xf32>
    %403 = arith.mulf %356, %399 : vector<1x1xf32>
    %cst_100 = arith.constant 1.000000e+00 : f32
    %404 = vector.broadcast %cst_100 : f32 to vector<1x1xf32>
    %405 = arith.subf %404, %356 : vector<1x1xf32>
    %406 = arith.mulf %405, %398 : vector<1x1xf32>
    %407 = arith.addf %402, %406 : vector<1x1xf32>
    %cst_101 = arith.constant 1.000000e+00 : f32
    %408 = vector.broadcast %cst_101 : f32 to vector<1x1xf32>
    %409 = arith.subf %408, %356 : vector<1x1xf32>
    %cst_102 = arith.constant 1.000000e+00 : f32
    %410 = vector.broadcast %cst_102 : f32 to vector<1x1xf32>
    %411 = arith.subf %410, %398 : vector<1x1xf32>
    %412 = arith.mulf %409, %411 : vector<1x1xf32>
    %413 = arith.addf %403, %412 : vector<1x1xf32>
    %414 = arith.divf %402, %407 : vector<1x1xf32>
    %415 = arith.divf %403, %413 : vector<1x1xf32>
    %416 = arith.mulf %414, %407 : vector<1x1xf32>
    %cst_103 = arith.constant 1.000000e+00 : f32
    %417 = vector.broadcast %cst_103 : f32 to vector<1x1xf32>
    %418 = arith.subf %417, %407 : vector<1x1xf32>
    %419 = arith.mulf %415, %418 : vector<1x1xf32>
    %420 = arith.addf %416, %419 : vector<1x1xf32>
    %cst_104 = arith.constant 1.000000e+00 : f32
    %421 = vector.broadcast %cst_104 : f32 to vector<1x1xf32>
    %422 = arith.subf %421, %397 : vector<1x1xf32>
    %423 = arith.mulf %420, %422 : vector<1x1xf32>
    %cst_105 = arith.constant 1.000000e+00 : f32
    %424 = vector.broadcast %cst_105 : f32 to vector<1x1xf32>
    %425 = arith.subf %424, %420 : vector<1x1xf32>
    %426 = arith.mulf %425, %396 : vector<1x1xf32>
    %427 = arith.addf %423, %426 : vector<1x1xf32>
    %c7_i32 = arith.constant 7 : i32
    %428 = vector.broadcast %c7_i32 : i32 to vector<1x8xi32>
    %429 = arith.cmpi eq, %30, %428 : vector<1x8xi32>
    %430 = vector.shape_cast %407 : vector<1x1xf32> to vector<1x1xf32>
    %431 = vector.broadcast %430 : vector<1x1xf32> to vector<1x8xf32>
    %432 = arith.select %429, %431, %381 : vector<1x8xi1>, vector<1x8xf32>
    %c7_i32_106 = arith.constant 7 : i32
    %433 = vector.broadcast %c7_i32_106 : i32 to vector<1x8xi32>
    %434 = arith.cmpi eq, %30, %433 : vector<1x8xi32>
    %435 = vector.shape_cast %427 : vector<1x1xf32> to vector<1x1xf32>
    %436 = vector.broadcast %435 : vector<1x1xf32> to vector<1x8xf32>
    %437 = arith.select %434, %436, %386 : vector<1x8xi1>, vector<1x8xf32>
    %c0_107 = arith.constant 0 : index
    %c0_108 = arith.constant 0 : index
    %438 = vector.load %arg7[%c0_107, %c0_108] : memref<1x8xf32, #tpu.memory_space<vmem>>, vector<1x8xf32>
    tpu.vector_store %arg7[%c0_107, %c0_108], %437 {strides = array<i32>} : memref<1x8xf32, #tpu.memory_space<vmem>>, vector<1x8xf32>,
    %c0_109 = arith.constant 0 : index
    %c0_110 = arith.constant 0 : index
    %439 = vector.load %arg8[%c0_109, %c0_110] : memref<1x8xf32, #tpu.memory_space<vmem>>, vector<1x8xf32>
    tpu.vector_store %arg8[%c0_109, %c0_110], %432 {strides = array<i32>} : memref<1x8xf32, #tpu.memory_space<vmem>>, vector<1x8xf32>,
    %440 = arith.mulf %437, %15 : vector<1x8xf32>
    %441 = vector.shape_cast %440 : vector<1x8xf32> to vector<1x1x8xf32>
    %cst_111 = arith.constant dense<0.000000e+00> : vector<1xf32>
    %442 = vector.multi_reduction <add>, %441, %cst_111 [1, 2] : vector<1x1x8xf32> to vector<1xf32>
    %443 = vector.shape_cast %442 : vector<1xf32> to vector<1x1x1xf32>
    %444 = vector.extract %443[0, 0, 0] : f32 from vector<1x1x1xf32>
    %445 = vector.broadcast %444 : f32 to vector<1x1xf32>
    %cst_112 = arith.constant 0.000000e+00 : f32
    %446 = vector.broadcast %cst_112 : f32 to vector<1x1xf32>
    %447 = arith.subf %446, %445 : vector<1x1xf32>
    %c0_113 = arith.constant 0 : index
    %c0_114 = arith.constant 0 : index
    %448 = vector.load %arg9[%c0_113, %c0_114] : memref<1x1xf32, #tpu.memory_space<vmem>>, vector<1x1xf32>
    tpu.vector_store %arg9[%c0_113, %c0_114], %447 {strides = array<i32>} : memref<1x1xf32, #tpu.memory_space<vmem>>, vector<1x1xf32>,
    return
  }
}

</mosaic_0001>

<bundles_post_ra>
// kernel: tpu_custom_call.1
= control target key start
LH: loop header
LB: loop body
LE: loop exit
PB: predicated region body
PF: predicated region fallthrough
CT: control target
= control target key end

     0   :  { %16 = vsyncpa [#allocation5], 0  ;;  %s1792_s0 = inlined_call_operand.vmem [shape: bf16[8,4], index: 0, kind: input, shape index: {}]   ;;  %s1793_s1 = inlined_call_operand.vmem [shape: f32[1,8], index: 1, kind: input, shape index: {}]   ;;  %s1794_s2 = inlined_call_operand.hbm [shape: bf16[4,32], index: 2, kind: input, shape index: {}]   ;;  %s1795_s3 = inlined_call_operand.vmem [shape: bf16[36,36], index: 3, kind: input, shape index: {}]   ;;  %s1796_s4 = inlined_call_operand.vmem [shape: f32[1,32], index: 4, kind: input, shape index: {}]   ;;  %s1797_s5 = inlined_call_operand.vmem [shape: f32[1,4], index: 5, kind: input, shape index: {}]   ;;  %s1798_s6 = inlined_call_operand.<no memory space> [shape: f32[1], index: 6, kind: input, shape index: {}]   ;;  %s1799_s7 = inlined_call_operand.hbm [shape: f32[1,8], index: 7, kind: output, shape index: {0}]   ;;  %s1800_s8 = inlined_call_operand.hbm [shape: f32[1,8], index: 8, kind: output, shape index: {1}]   ;;  %s1801_s9 = inlined_call_operand.hbm [shape: f32[1,1], index: 9, kind: output, shape index: {2}]  }
   0x1   :  { %17 = vsyncpa [#allocation6], 0 }
   0x2   :  { %18 = vsyncpa [#allocation9], 0  ;;  %s1283_s30 = smov [#allocation4]   ;;  %s1189_s13 = scalar_lea.hbm %s1794_s2, 32 }
   0x3   :  { %s29_s10 = sshll.u32 %s1283_s30, 4  ;;  %p1190_p0 = scmp.ne.s32.totalorder %s1794_s2, %s1189_s13  ;;  %s30_s10 = int_to_ptr.vmem [resolvable:$true] %s29_s10 }
   0x4   :  { %p1193_p1 = scmp.lt.u32.totalorder %s1189_s13, %s1794_s2 }
   0x6   :  { %p1195_p2 = pnand %p1193_p1, %p1190_p0 }
   0x8   :  { %1198 = shalt.err (!%p1195_p2)
}
   0x9   :  { %s1199_s18 = scalar_lea.vmem %s30_s10, 32  ;;  %p1204_p4 = scmp.lt.s32.totalorder %s30_s10, %s30_s10 }
   0xa   :  { %p1200_p3 = scmp.ne.s32.totalorder %s30_s10, %s1199_s18  ;;  %p1205_p5 = scmp.lt.s32.totalorder %s1199_s18, %s1199_s18 }
   0xc   :  { %p1206_p6 = por %p1205_p5, %p1204_p4 }
   0xe   :  { %p1207_p7 = pnand %p1206_p6, %p1200_p3 }
  0x10   :  { %1210 = shalt.err (!%p1207_p7)
}
  0x11   :  { %32 = dma.hbm_to_vmem [thread:$0]  %s1794_s2, 32, %s30_s10, [#allocation5]  }
  0x12   :  { %1277 = dma.done.wait [#allocation5], 32  }
  0x13   :  { %1278 = vsyncadd [#allocation5], 4294967264  ;;  %v1284_v0 = vmov 0.0   ;;  %vm1285_vm0 = vmmov 0   ;;  %vm91_vm1 = vcmask 1041408   ;;  %s1286_s2 = smov 32   ;;  %v1429_v36 = vstv %s1798_s6 }
  0x14   :  { %1021 = vmatprep.subr.bf16.mxu0 %v1284_v0  ;;  %1023 = vmatprep.mubr.msk.bf16.mxu0 %vm1285_vm0, %v1284_v0  ;;  %v972_v1 = vld [vmem:[%s1797_s5] ss:$0 sm:$0xff]  ;;  %v79_v2 = vld [vmem:[#allocation4] sm:$0x3]  ;;  %vm87_vm2 = vcmask 31744   ;;  %vm46_vm3 = vcmask 57344  }
  0x15   :  { %1027 = vmatprep.subr.bf16.mxu1 %v1284_v0  ;;  %1033 = vmatprep.mubr.msk.bf16.mxu1 %vm1285_vm0, %v1284_v0  ;;  %v93_v3 = vsel %vm91_vm1, %v79_v2, 0  ;;  %v78_v4 = vld [vmem:[%s1792_s0] sm:$0xf]  ;;  %v1388_v8 = vld [vmem:[%s1795_s3 + $0x8] sm:$0xff]   ;;  %vm135_vm4 = vcmask 261120   ;;  %vm146_vm5 = vcmask 294144  }
  0x16   :  { %143 = vrot.lane.b32.xlu0 %v972_v1, %s1286_s2  ;;  %1022 = vmatpush3.bf16.msra.mxu0 %v93_v3  ;;  %v1375_v5 = vld [vmem:[%s1793_s1] sm:$0x1]  ;;  %v1118_v9 = vld [vmem:[%s1795_s3 + $0x10] ss:$0 sps:$4 sm:$0x33]   ;;  %vm230_vm6 = vcmask 293888  }
  0x17   :  { %1037 = vmatprep.subr.bf16.mxu0 %v1284_v0  ;;  %v47_v6 = vsel %vm46_vm3, %v1375_v5, -inf  ;;  %v1382_v7 = vld [vmem:[%s1795_s3] sm:$0xff]   ;;  %v1399_v10 = vsel %vm91_vm1, %v1118_v9, 0  ;;  %v167_v37 = vsub.f32 1.0, %v1429_v36  ;;  %s1288_s13 = smov 1   ;;  %s1289_s6 = smov 2  }
  0x18   :  { %1028 = vmatpush3.bf16.msra.mxu1 %v1382_v7  ;;  %v970_v19 = vld [vmem:[%s1796_s4] ss:$0 sm:$0xff]  ;;  %s1287_s4 = smov 3   ;;  %s1291_s17 = smov [#allocation8]  }
  0x19   :  { %1024 = vmatmul.mubr.msk.bf16.vlgmr.msra.gmra.mrb[0].mxu0 %vm87_vm2, %v78_v4  ;;  %1029 = vmatprep.subr.bf16.mxu1 %v1284_v0  ;;  %s944_s18 = sshll.u32 %s1291_s17, 4  ;;  %s1292_s19 = smov [#allocation7]   ;;  %s945_s18 = int_to_ptr.vmem [resolvable:$true] %s944_s18 }
  0x1a   :  { %1043 = vmatprep.mubr.msk.bf16.mxu0 %vm1285_vm0, %v1284_v0  ;;  %1038 = vmatpush3.bf16.msra.mxu0 %v1382_v7  ;;  %s934_s20 = sshll.u32 %s1292_s19, 4  ;;  %s1211_s21 = scalar_lea.vmem %s945_s18, 16  ;;  %s935_s20 = int_to_ptr.vmem [resolvable:$true] %s934_s20 }
  0x1b   :  { %1039 = vmatprep.subr.bf16.mxu0 %v1284_v0  ;;  %p1212_p8 = scmp.ne.s32.totalorder %s945_s18, %s1211_s21  ;;  %s1215_s22 = scalar_lea.vmem %s945_s18, 32 }
  0x1c   :  { %1030 = vmatpush3.bf16.msra.mxu1 %v1388_v8  ;;  %p1216_p9 = scmp.lt.s32.totalorder %s945_s18, %s945_s18  ;;  %p1217_p10 = scmp.lt.s32.totalorder %s1215_s22, %s1211_s21 }
  0x1d   :  { %1031 = vmatprep.subr.bf16.mxu1 %v1284_v0 }
  0x1e   :  { %1040 = vmatpush3.bf16.msra.mxu0 %v1388_v8  ;;  %p1218_p11 = por %p1217_p10, %p1216_p9 }
  0x1f   :  { %1041 = vmatprep.subr.bf16.mxu0 %v1284_v0 }
  0x20   :  { %1032 = vmatpush3.bf16.msra.mxu1 %v1399_v10  ;;  %p1219_p12 = pnand %p1218_p11, %p1212_p8 }
  0x21   :  { %1047 = vmatprep.subr.bf16.mxu1 %v1284_v0 }
  0x22   :  { %1042 = vmatpush3.bf16.msra.mxu0 %v1399_v10 }
  0x23   :  { %1057 = vmatprep.subr.bf16.mxu0 %v1284_v0 }
  0x35   :  { %48 = vmax.xlane.f32.xlu0 %v47_v6 }
  0x88   :  { %v144_v11 = vpop.permute.xlu0 %143 }
  0xc2   :  { %v49_v12 = vpop.xlane.xlu0 %48 }
  0xc3   :  { %v50_v13 = vrot.slane %v49_v12, 4 }
  0xc5   :  { %v51_v14 = vmax.f32 %v49_v12, %v50_v13 }
  0xc7   :  { %v52_v15 = vrot.slane %v51_v14, 2 }
  0xc9   :  { %v53_v16 = vmax.f32 %v51_v14, %v52_v15 }
  0xcb   :  { %v54_v17 = vrot.slane %v53_v16, 1 }
  0xcd   :  { %v55_v18 = vmax.f32 %v53_v16, %v54_v17 }
  0xcf   :  { %1097 = vpush %v55_v18 }
  0xec   :  { %v129_v20 = vpop.f32.mrb[0].mxu0 }
  0xed   :  { %v130_v21 = vadd.f32 %v970_v19, %v129_v20  ;;  %v1025_v22 = vpop.f32.mrb[1].mxu0 }
  0xee   :  { %v132_v23 = vpop.f32.mrb[2].mxu0 }
  0xef   :  { %136 = vst.msk [vmem:[#allocation2] sm:$0xff] %vm135_vm4, %v130_v21  ;;  %v1026_v24 = vpop.f32.mrb[3].mxu0 }
  0xf0   :  { %147 = vst.msk [vmem:[#allocation2] sm:$0xff] %vm146_vm5, %v144_v11 }
  0xf7   :  { %v157_v25 = vld [vmem:[#allocation2] sm:$0x1]  ;;  %v214_v41 = vld [vmem:[#allocation2 + $0x1] sm:$0x1]  ;;  %v330_v53 = vld [vmem:[#allocation2 + $0x2] sm:$0x1] }
  0xf8   :  { %v973_v26 = vmul.f32 -1.442695, %v157_v25  ;;  %v427_v2 = vld [vmem:[#allocation2 + $0x3] sm:$0x1]  ;;  %v524_v18 = vld [vmem:[#allocation2 + $0x4] sm:$0x1] }
  0xfa   :  { %1121 = vpow2.f32 %v973_v26 }
 0x100   :  { %s1410_s10 = spop %1097 }
 0x101   :  { %v57_v27 = vstv %s1410_s10 }
 0x102   :  { %v58_v28 = vsub.f32 %v1375_v5, %v57_v27 }
 0x104   :  { %v59_v29 = vmul.f32 1.442695, %v58_v28  ;;  %v1122_v30 = vpop.eup %1121 }
 0x105   :  { %v161_v31 = vadd.f32 1.0, %v1122_v30 }
 0x106   :  { %1123 = vpow2.f32 %v59_v29 }
 0x107   :  { %1125 = vrcp.f32 %v161_v31 }
 0x110   :  { %v1124_v32 = vpop.eup %1123 }
 0x111   :  { %v61_v33 = vsel %vm46_vm3, %v1124_v32, 0.0  ;;  %v1415_v34 = vpop.eup %1125 }
 0x112   :  { %62 = vadd.xlane.f32.xlu1 %v61_v33  ;;  %195 = vrot.lane.b32.xlu0 %v1415_v34, %s1287_s4  ;;  %v213_v35 = vpack.c.bf16 %v1415_v34, %v1415_v34  ;;  %v168_v38 = vmul.f32 %v1415_v34, %v167_v37  ;;  %v1438_v39 = vsub.f32 1.0, %v1415_v34 }
 0x114   :  { %1034 = vmatmul.mubr.msk.bf16.vlgmr.msra.gmra.mrb[0].mxu1 %vm230_vm6, %v213_v35  ;;  %v174_v40 = vmul.f32 %v167_v37, %v1438_v39 }
 0x115   :  { %1048 = vmatpush3.bf16.msra.mxu1 %v1382_v7  ;;  %1053 = vmatprep.mubr.msk.bf16.mxu1 %vm1285_vm0, %v1284_v0 }
 0x116   :  { %1049 = vmatprep.subr.bf16.mxu1 %v1284_v0 }
 0x119   :  { %1050 = vmatpush3.bf16.msra.mxu1 %v1388_v8 }
 0x11a   :  { %1051 = vmatprep.subr.bf16.mxu1 %v1284_v0 }
 0x11d   :  { %1052 = vmatpush3.bf16.msra.mxu1 %v1399_v10 }
 0x11e   :  { %1067 = vmatprep.subr.bf16.mxu1 %v1284_v0 }
 0x123   :  { %170 = vrot.lane.b32.xlu1 %v168_v38, %s1288_s13 }
 0x127   :  { %176 = vrot.lane.b32.xlu1 %v174_v40, %s1288_s13 }
 0x19f   :  { %v63_v30 = vpop.xlane.xlu1 %62 }
 0x1a3   :  { %v171_v31 = vpop.permute.xlu1 %170 }
 0x1a7   :  { %v1527_v32 = vpop.permute.xlu1 %176 }
 0x1e7   :  { %v271_v42 = vpop.f32.mrb[0].mxu1 }
 0x1e8   :  { %v272_v43 = vadd.f32 %v271_v42, %v214_v41  ;;  %v1035_v44 = vpop.f32.mrb[1].mxu1 }
 0x1e9   :  { %v274_v45 = vpop.f32.mrb[2].mxu1 }
 0x1ea   :  { %v978_v46 = vmul.f32 -1.442695, %v272_v43  ;;  %v1036_v47 = vpop.f32.mrb[3].mxu1 }
 0x1ec   :  { %1127 = vpow2.f32 %v978_v46 }
 0x1f6   :  { %v1128_v48 = vpop.eup %1127 }
 0x1f7   :  { %v280_v49 = vadd.f32 1.0, %v1128_v48 }
 0x1f9   :  { %1129 = vrcp.f32 %v280_v49 }
 0x203   :  { %v1443_v50 = vpop.eup %1129 }
 0x204   :  { %287 = vrot.lane.b32.xlu1 %v1443_v50, %s1288_s13  ;;  %v329_v51 = vpack.c.bf16 %v1443_v50, %v1443_v50  ;;  %v1451_v52 = vsub.f32 1.0, %v1443_v50 }
 0x206   :  { %1044 = vmatmul.mubr.msk.bf16.vlgmr.msra.gmra.mrb[4].mxu0 %vm230_vm6, %v329_v51 }
 0x207   :  { %1058 = vmatpush3.bf16.msra.mxu0 %v1382_v7  ;;  %1063 = vmatprep.mubr.msk.bf16.mxu0 %vm1285_vm0, %v1284_v0 }
 0x208   :  { %293 = vrot.lane.b32.xlu1 %v1451_v52, %s1288_s13  ;;  %1059 = vmatprep.subr.bf16.mxu0 %v1284_v0 }
 0x20b   :  { %1060 = vmatpush3.bf16.msra.mxu0 %v1388_v8 }
 0x20c   :  { %1061 = vmatprep.subr.bf16.mxu0 %v1284_v0 }
 0x20f   :  { %1062 = vmatpush3.bf16.msra.mxu0 %v1399_v10 }
 0x210   :  { %1077 = vmatprep.subr.bf16.mxu0 %v1284_v0 }
 0x276   :  { %v288_v35 = vpop.permute.xlu1 %287 }
 0x2d9   :  { %v368_v54 = vpop.f32.mrb[4].mxu0 }
 0x2da   :  { %v369_v55 = vadd.f32 %v368_v54, %v330_v53  ;;  %v1045_v56 = vpop.f32.mrb[5].mxu0  ;;  %v1571_v53 = vpop.permute.xlu0 %195 }
 0x2db   :  { %v371_v57 = vpop.f32.mrb[6].mxu0 }
 0x2dc   :  { %v980_v58 = vmul.f32 -1.442695, %v369_v55  ;;  %v1046_v59 = vpop.f32.mrb[7].mxu0 }
 0x2de   :  { %1131 = vpow2.f32 %v980_v58 }
 0x2e8   :  { %v1132_v60 = vpop.eup %1131 }
 0x2e9   :  { %v377_v61 = vadd.f32 1.0, %v1132_v60 }
 0x2eb   :  { %1133 = vrcp.f32 %v377_v61 }
 0x2f5   :  { %v1463_v62 = vpop.eup %1133 }
 0x2f6   :  { %384 = vrot.lane.b32.xlu1 %v1463_v62, %s1288_s13  ;;  %v426_v63 = vpack.c.bf16 %v1463_v62, %v1463_v62  ;;  %v1471_v1 = vsub.f32 1.0, %v1463_v62 }
 0x2f8   :  { %1054 = vmatmul.mubr.msk.bf16.vlgmr.msra.gmra.mrb[4].mxu1 %vm230_vm6, %v426_v63 }
 0x2f9   :  { %1068 = vmatpush3.bf16.msra.mxu1 %v1382_v7  ;;  %1073 = vmatprep.mubr.msk.bf16.mxu1 %vm1285_vm0, %v1284_v0 }
 0x2fa   :  { %390 = vrot.lane.b32.xlu1 %v1471_v1, %s1288_s13  ;;  %1069 = vmatprep.subr.bf16.mxu1 %v1284_v0 }
 0x2fd   :  { %1070 = vmatpush3.bf16.msra.mxu1 %v1388_v8 }
 0x2fe   :  { %1071 = vmatprep.subr.bf16.mxu1 %v1284_v0 }
 0x301   :  { %1072 = vmatpush3.bf16.msra.mxu1 %v1399_v10 }
 0x302   :  { %1087 = vmatprep.subr.bf16.mxu1 %v1284_v0 }
 0x3cb   :  { %v465_v3 = vpop.f32.mrb[4].mxu1 }
 0x3cc   :  { %v466_v4 = vadd.f32 %v465_v3, %v427_v2  ;;  %v1055_v6 = vpop.f32.mrb[5].mxu1 }
 0x3cd   :  { %v468_v9 = vpop.f32.mrb[6].mxu1 }
 0x3ce   :  { %v982_v11 = vmul.f32 -1.442695, %v466_v4  ;;  %v1056_v12 = vpop.f32.mrb[7].mxu1 }
 0x3d0   :  { %1135 = vpow2.f32 %v982_v11 }
 0x3da   :  { %v1136_v13 = vpop.eup %1135 }
 0x3db   :  { %v474_v14 = vadd.f32 1.0, %v1136_v13 }
 0x3dd   :  { %1137 = vrcp.f32 %v474_v14  ;;  %v621_v14 = vld [vmem:[#allocation2 + $0x5] sm:$0x1] }
 0x3e7   :  { %v1483_v15 = vpop.eup %1137 }
 0x3e8   :  { %481 = vrot.lane.b32.xlu1 %v1483_v15, %s1288_s13  ;;  %v523_v16 = vpack.c.bf16 %v1483_v15, %v1483_v15  ;;  %v1491_v17 = vsub.f32 1.0, %v1483_v15 }
 0x3ea   :  { %1064 = vmatmul.mubr.msk.bf16.vlgmr.msra.gmra.mrb[8].mxu0 %vm230_vm6, %v523_v16 }
 0x3eb   :  { %1078 = vmatpush3.bf16.msra.mxu0 %v1382_v7  ;;  %1083 = vmatprep.mubr.msk.bf16.mxu0 %vm1285_vm0, %v1284_v0 }
 0x3ec   :  { %487 = vrot.lane.b32.xlu1 %v1491_v17, %s1288_s13  ;;  %1079 = vmatprep.subr.bf16.mxu0 %v1284_v0 }
 0x3ef   :  { %1080 = vmatpush3.bf16.msra.mxu0 %v1388_v8 }
 0x3f0   :  { %1081 = vmatprep.subr.bf16.mxu0 %v1284_v0 }
 0x3f3   :  { %1082 = vmatpush3.bf16.msra.mxu0 %v1399_v10 }
 0x4bd   :  { %v562_v19 = vpop.f32.mrb[8].mxu0 }
 0x4be   :  { %v563_v20 = vadd.f32 %v562_v19, %v524_v18  ;;  %v1065_v21 = vpop.f32.mrb[9].mxu0 }
 0x4bf   :  { %v565_v22 = vpop.f32.mrb[10].mxu0 }
 0x4c0   :  { %v984_v23 = vmul.f32 -1.442695, %v563_v20  ;;  %v1066_v24 = vpop.f32.mrb[11].mxu0 }
 0x4c2   :  { %1139 = vpow2.f32 %v984_v23 }
 0x4cc   :  { %v1140_v25 = vpop.eup %1139 }
 0x4cd   :  { %v571_v26 = vadd.f32 1.0, %v1140_v25 }
 0x4cf   :  { %1141 = vrcp.f32 %v571_v26 }
 0x4d9   :  { %v1502_v27 = vpop.eup %1141 }
 0x4da   :  { %578 = vrot.lane.b32.xlu1 %v1502_v27, %s1288_s13  ;;  %v620_v28 = vpack.c.bf16 %v1502_v27, %v1502_v27  ;;  %v1509_v29 = vsub.f32 1.0, %v1502_v27 }
 0x4dc   :  { %1074 = vmatmul.mubr.msk.bf16.vlgmr.msra.gmra.mrb[8].mxu1 %vm230_vm6, %v620_v28  ;;  %584 = vrot.lane.b32.xlu0 %v1509_v29, %s1288_s13 }
 0x4dd   :  { %1088 = vmatpush3.bf16.msra.mxu1 %v1382_v7  ;;  %1093 = vmatprep.mubr.msk.bf16.mxu1 %vm1285_vm0, %v1284_v0  ;;  %v1525_v7 = vmul.f32 %v1438_v39, %v1429_v36 }
 0x4de   :  { %189 = vrot.lane.b32.xlu1 %v1438_v39, %s1289_s6  ;;  %1089 = vmatprep.subr.bf16.mxu1 %v1284_v0 }
 0x4df   :  { %v1530_v33 = vadd.f32 %v171_v31, %v1525_v7  ;;  %v64_v31 = vrot.slane %v63_v30, 4 }
 0x4e1   :  { %1090 = vmatpush3.bf16.msra.mxu1 %v1388_v8  ;;  %v1533_v37 = vsub.f32 1.0, %v1530_v33 }
 0x4e2   :  { %1091 = vmatprep.subr.bf16.mxu1 %v1284_v0  ;;  %v1538_v0 = vmul.f32 %v1451_v52, %v1530_v33 }
 0x4e3   :  { %v290_v8 = vmul.f32 %v288_v35, %v1533_v37  ;;  %v65_v35 = vadd.f32 %v64_v31, %v63_v30 }
 0x4e5   :  { %1092 = vmatpush3.bf16.msra.mxu1 %v1399_v10  ;;  %v1540_v10 = vpop.permute.xlu1 %293  ;;  %v1543_v38 = vadd.f32 %v290_v8, %v1538_v0 }
 0x4e7   :  { %v1546_v40 = vsub.f32 1.0, %v1543_v38  ;;  %v1551_v42 = vmul.f32 %v1471_v1, %v1543_v38 }
 0x4e9   :  { %v385_v39 = vpop.permute.xlu1 %384 }
 0x4ea   :  { %v387_v41 = vmul.f32 %v385_v39, %v1546_v40  ;;  %v66_v39 = vrot.slane %v65_v35, 2 }
 0x4ec   :  { %v1556_v44 = vadd.f32 %v387_v41, %v1551_v42 }
 0x4ed   :  { %v1553_v43 = vpop.permute.xlu1 %390 }
 0x4ee   :  { %v1559_v46 = vsub.f32 1.0, %v1556_v44  ;;  %v1564_v48 = vmul.f32 %v1491_v17, %v1556_v44 }
 0x4f1   :  { %v482_v45 = vpop.permute.xlu1 %481 }
 0x4f2   :  { %v484_v47 = vmul.f32 %v482_v45, %v1559_v46 }
 0x4f4   :  { %v1567_v49 = vadd.f32 %v484_v47, %v1564_v48 }
 0x4f5   :  { %v1569_v51 = vpop.permute.xlu1 %487 }
 0x4f6   :  { %v1574_v54 = vsub.f32 1.0, %v1567_v49  ;;  %v575_v56 = vmul.f32 %v1509_v29, %v1567_v49  ;;  %v576_v60 = vmul.f32 %v1502_v27, %v1567_v49 }
 0x54c   :  { %v579_v55 = vpop.permute.xlu1 %578 }
 0x54d   :  { %v581_v57 = vmul.f32 %v579_v55, %v1574_v54 }
 0x54e   :  { %v585_v58 = vpop.permute.xlu0 %584 }
 0x54f   :  { %v1579_v59 = vadd.f32 %v581_v57, %v575_v56  ;;  %v587_v61 = vmul.f32 %v585_v58, %v1574_v54 }
 0x550   :  { %v1603_v8 = vpop.permute.xlu1 %189 }
 0x551   :  { %v588_v63 = vadd.f32 %v587_v61, %v576_v60  ;;  %1143 = vrcp.f32 %v1579_v59  ;;  %v594_v6 = vsub.f32 1.0, %v1579_v59 }
 0x553   :  { %1145 = vrcp.f32 %v588_v63 }
 0x55b   :  { %v1144_v2 = vpop.eup %1143 }
 0x55c   :  { %v590_v3 = vmul.f32 %v1144_v2, %v575_v56 }
 0x55d   :  { %v1146_v4 = vpop.eup %1145 }
 0x55e   :  { %v593_v9 = vmul.f32 %v590_v3, %v1579_v59  ;;  %v592_v11 = vmul.f32 %v1146_v4, %v576_v60  ;;  %v67_v60 = vadd.f32 %v66_v39, %v65_v35 }
 0x560   :  { %v595_v12 = vmul.f32 %v594_v6, %v592_v11  ;;  %v68_v30 = vrot.slane %v67_v60, 1 }
 0x562   :  { %v1587_v13 = vadd.f32 %v595_v12, %v593_v9  ;;  %v69_v63 = vadd.f32 %v68_v30, %v67_v60 }
 0x564   :  { %1099 = vpush %v69_v63 }
 0x595   :  { %s1100_s14 = spop %1099 }
 0x5af   :  { %v659_v16 = vpop.f32.mrb[8].mxu1 }
 0x5b0   :  { %v660_v18 = vadd.f32 %v659_v16, %v621_v14  ;;  %v1075_v19 = vpop.f32.mrb[9].mxu1 }
 0x5b1   :  { %v662_v20 = vpop.f32.mrb[10].mxu1 }
 0x5b2   :  { %v986_v21 = vmul.f32 -1.442695, %v660_v18  ;;  %v1076_v22 = vpop.f32.mrb[11].mxu1  ;;  %v718_v20 = vld [vmem:[#allocation2 + $0x6] sm:$0x1] }
 0x5b4   :  { %1147 = vpow2.f32 %v986_v21 }
 0x5be   :  { %v1148_v23 = vpop.eup %1147 }
 0x5bf   :  { %v668_v24 = vadd.f32 1.0, %v1148_v23 }
 0x5c1   :  { %1149 = vrcp.f32 %v668_v24 }
 0x5cb   :  { %v1589_v25 = vpop.eup %1149 }
 0x5cc   :  { %675 = vrot.lane.b32.xlu0 %v1589_v25, %s1288_s13  ;;  %v717_v26 = vpack.c.bf16 %v1589_v25, %v1589_v25  ;;  %v1596_v28 = vsub.f32 1.0, %v1589_v25  ;;  %v673_v57 = vmul.f32 %v1589_v25, %v1579_v59 }
 0x5ce   :  { %1084 = vmatmul.mubr.msk.bf16.vlgmr.msra.gmra.mrb[12].mxu0 %vm230_vm6, %v717_v26  ;;  %681 = vrot.lane.b32.xlu1 %v1596_v28, %s1288_s13  ;;  %v672_v45 = vmul.f32 %v1596_v28, %v1579_v59 }
 0x5d0   :  { %311 = vrot.lane.b32.xlu0 %v1443_v50, %s1287_s4 }
 0x63e   :  { %v676_v41 = vpop.permute.xlu0 %675 }
 0x63f   :  { %v678_v47 = vmul.f32 %v676_v41, %v594_v6 }
 0x640   :  { %v682_v55 = vpop.permute.xlu1 %681 }
 0x641   :  { %v1607_v56 = vadd.f32 %v678_v47, %v672_v45  ;;  %v684_v58 = vmul.f32 %v682_v55, %v594_v6  ;;  %v71_v6 = vstv %s1100_s14 }
 0x642   :  { %v1630_v55 = vpop.permute.xlu0 %311 }
 0x643   :  { %v685_v61 = vadd.f32 %v684_v58, %v673_v57  ;;  %1151 = vrcp.f32 %v1607_v56  ;;  %v691_v9 = vsub.f32 1.0, %v1607_v56 }
 0x645   :  { %1153 = vrcp.f32 %v685_v61 }
 0x646   :  { %1155 = vlog2.f32 %v71_v6 }
 0x64d   :  { %v1152_v2 = vpop.eup %1151 }
 0x64e   :  { %v687_v3 = vmul.f32 %v1152_v2, %v672_v45 }
 0x64f   :  { %v1154_v4 = vpop.eup %1153 }
 0x650   :  { %v689_v11 = vmul.f32 %v1154_v4, %v673_v57  ;;  %v690_v12 = vmul.f32 %v687_v3, %v1607_v56  ;;  %v1156_v18 = vpop.eup %1155 }
 0x651   :  { %v73_v19 = vmul.f32 0.6931472, %v1156_v18 }
 0x652   :  { %v692_v14 = vmul.f32 %v691_v9, %v689_v11 }
 0x653   :  { %1101 = vpush %v73_v19 }
 0x654   :  { %v1614_v16 = vadd.f32 %v692_v14, %v690_v12 }
 0x684   :  { %s1102_s15 = spop %1101 }
 0x685   :  { %s75_s16 = sadd.f32 %s1102_s15, %s1410_s10 }
 0x6a1   :  { %v756_v21 = vpop.f32.mrb[12].mxu0 }
 0x6a2   :  { %v757_v22 = vadd.f32 %v756_v21, %v718_v20  ;;  %v1085_v23 = vpop.f32.mrb[13].mxu0  ;;  %v1290_v20 = vmov 35  }
 0x6a3   :  { %v759_v24 = vpop.f32.mrb[14].mxu0  ;;  %1116 = vset.pattern.permute.xlu1 %v1290_v20  ;;  %1117 = vset.pattern.permute.xlu0 %v1290_v20 }
 0x6a4   :  { %v988_v26 = vmul.f32 -1.442695, %v757_v22  ;;  %v1086_v31 = vpop.f32.mrb[15].mxu0 }
 0x6a6   :  { %1157 = vpow2.f32 %v988_v26 }
 0x6b0   :  { %v1158_v35 = vpop.eup %1157 }
 0x6b1   :  { %v765_v39 = vadd.f32 1.0, %v1158_v35 }
 0x6b3   :  { %1159 = vrcp.f32 %v765_v39 }
 0x6bd   :  { %v1616_v41 = vpop.eup %1159 }
 0x6be   :  { %772 = vrot.lane.b32.xlu1 %v1616_v41, %s1288_s13  ;;  %v814_v45 = vpack.c.bf16 %v1616_v41, %v1616_v41  ;;  %v1623_v47 = vsub.f32 1.0, %v1616_v41  ;;  %v770_v63 = vmul.f32 %v1616_v41, %v1607_v56 }
 0x6c0   :  { %1094 = vmatmul.mubr.msk.bf16.vlgmr.msra.gmra.mrb[12].mxu1 %vm230_vm6, %v814_v45  ;;  %778 = vrot.lane.b32.xlu0 %v1623_v47, %s1288_s13  ;;  %v769_v58 = vmul.f32 %v1623_v47, %v1607_v56  ;;  %v166_v45 = vmul.f32 %v1415_v34, %v1429_v36 }
 0x6c2   :  { %306 = vrot.lane.b32.xlu1 %v1451_v52, %s1289_s6 }
 0x730   :  { %v773_v57 = vpop.permute.xlu1 %772 }
 0x731   :  { %v775_v60 = vmul.f32 %v773_v57, %v691_v9  ;;  %v179_v57 = vadd.f32 %v1527_v32, %v166_v45 }
 0x732   :  { %v779_v61 = vpop.permute.xlu0 %778 }
 0x733   :  { %v1634_v30 = vadd.f32 %v775_v60, %v769_v58  ;;  %v781_v2 = vmul.f32 %v779_v61, %v691_v9  ;;  %v815_v9 = vld [vmem:[#allocation2 + $0x7] sm:$0x1]  ;;  %v285_v60 = vmul.f32 %v1443_v50, %v1530_v33 }
 0x735   :  { %v782_v3 = vadd.f32 %v781_v2, %v770_v63  ;;  %1161 = vrcp.f32 %v1634_v30  ;;  %v1640_v12 = vsub.f32 1.0, %v1634_v30 }
 0x737   :  { %1163 = vrcp.f32 %v782_v3 }
 0x73f   :  { %v1162_v4 = vpop.eup %1161 }
 0x740   :  { %v784_v52 = vmul.f32 %v1162_v4, %v769_v58  ;;  %v296_v58 = vmul.f32 %v1540_v10, %v1533_v37 }
 0x741   :  { %v1164_v11 = vpop.eup %1163 }
 0x742   :  { %v786_v14 = vmul.f32 %v1164_v11, %v770_v63  ;;  %v787_v6 = vmul.f32 %v784_v52, %v1634_v30  ;;  %v297_v61 = vadd.f32 %v296_v58, %v285_v60 }
 0x744   :  { %v789_v18 = vmul.f32 %v1640_v12, %v786_v14 }
 0x746   :  { %v1644_v19 = vadd.f32 %v789_v18, %v787_v6 }
 0x793   :  { %v853_v21 = vpop.f32.mrb[12].mxu1 }
 0x794   :  { %v854_v22 = vadd.f32 %v853_v21, %v815_v9  ;;  %v1095_v23 = vpop.f32.mrb[13].mxu1 }
 0x795   :  { %v856_v24 = vpop.f32.mrb[14].mxu1  ;;  %v479_v23 = vmul.f32 %v1483_v15, %v1556_v44 }
 0x796   :  { %v990_v26 = vmul.f32 -1.442695, %v854_v22  ;;  %v1096_v31 = vpop.f32.mrb[15].mxu1 }
 0x798   :  { %1165 = vpow2.f32 %v990_v26 }
 0x7a2   :  { %v1166_v35 = vpop.eup %1165 }
 0x7a3   :  { %v862_v39 = vadd.f32 1.0, %v1166_v35 }
 0x7a5   :  { %1167 = vrcp.f32 %v862_v39 }
 0x7a6   :  { %1169 = vrcp.f32 %v179_v57 }
 0x7a7   :  { %1171 = vrcp.f32 %v1530_v33 }
 0x7a8   :  { %1173 = vrcp.f32 %v297_v61 }
 0x7a9   :  { %1175 = vrcp.f32 %v1543_v38 }
 0x7af   :  { %v1168_v63 = vpop.eup %1167 }
 0x7b0   :  { %869 = vrot.lane.b32.xlu1 %v1168_v63, %s1288_s13  ;;  %v865_v2 = vsub.f32 1.0, %v1168_v63  ;;  %v1656_v34 = vmul.f32 %v1168_v63, %v1634_v30  ;;  %v1170_v50 = vpop.eup %1169 }
 0x7b1   :  { %v1172_v32 = vpop.eup %1171  ;;  %v183_v10 = vmul.f32 %v1170_v50, %v166_v45 }
 0x7b2   :  { %875 = vrot.lane.b32.xlu0 %v865_v2, %s1288_s13  ;;  %v1661_v36 = vmul.f32 %v865_v2, %v1634_v30  ;;  %v1174_v3 = vpop.eup %1173  ;;  %v181_v4 = vmul.f32 %v1172_v32, %v1525_v7 }
 0x7b3   :  { %v1176_v52 = vpop.eup %1175  ;;  %v301_v11 = vmul.f32 %v1174_v3, %v285_v60  ;;  %v186_v14 = vmul.f32 %v1533_v37, %v183_v10 }
 0x7b4   :  { %403 = vrot.lane.b32.xlu1 %v1471_v1, %s1289_s6  ;;  %v184_v1 = vmul.f32 %v181_v4, %v1530_v33  ;;  %v299_v6 = vmul.f32 %v1176_v52, %v1538_v0  ;;  %v307_v0 = vpop.permute.xlu1 %306 }
 0x7b5   :  { %v304_v7 = vmul.f32 %v1546_v40, %v301_v11 }
 0x7b6   :  { %408 = vrot.lane.b32.xlu0 %v1463_v62, %s1287_s4  ;;  %v302_v18 = vmul.f32 %v299_v6, %v1543_v38 }
 0x7b8   :  { %500 = vrot.lane.b32.xlu1 %v1491_v17, %s1289_s6  ;;  %v187_v17 = vadd.f32 %v186_v14, %v184_v1 }
 0x7ba   :  { %505 = vrot.lane.b32.xlu0 %v1483_v15, %s1287_s4  ;;  %v193_v37 = vsub.f32 1.0, %v187_v17  ;;  %v192_v20 = vmul.f32 %v1603_v8, %v187_v17  ;;  %v393_v8 = vmul.f32 %v1553_v43, %v1546_v40 }
 0x7bc   :  { %597 = vrot.lane.b32.xlu1 %v1509_v29, %s1289_s6  ;;  %v305_v29 = vadd.f32 %v304_v7, %v302_v18  ;;  %v601_v7 = vsub.f32 1.0, %v1587_v13 }
 0x7be   :  { %602 = vrot.lane.b32.xlu0 %v1502_v27, %s1287_s4  ;;  %v198_v27 = vmul.f32 %v1571_v53, %v193_v37  ;;  %v310_v9 = vsub.f32 1.0, %v305_v29  ;;  %v490_v53 = vmul.f32 %v1569_v51, %v1559_v46 }
 0x7c0   :  { %694 = vrot.lane.b32.xlu1 %v1596_v28, %s1289_s6  ;;  %v309_v28 = vmul.f32 %v307_v0, %v305_v29  ;;  %v199_v21 = vadd.f32 %v198_v27, %v192_v20 }
 0x7c2   :  { %699 = vrot.lane.b32.xlu0 %v1589_v25, %s1287_s4  ;;  %v314_v25 = vmul.f32 %v1630_v55, %v310_v9  ;;  %v491_v55 = vadd.f32 %v490_v53, %v479_v23 }
 0x7c4   :  { %791 = vrot.lane.b32.xlu1 %v1623_v47, %s1289_s6  ;;  %v315_v22 = vadd.f32 %v314_v25, %v309_v28 }
 0x7c6   :  { %796 = vrot.lane.b32.xlu0 %v1616_v41, %s1287_s4  ;;  %v382_v41 = vmul.f32 %v1463_v62, %v1543_v38 }
 0x7c8   :  { %888 = vrot.lane.b32.xlu1 %v865_v2, %s1289_s6  ;;  %v394_v47 = vadd.f32 %v393_v8, %v382_v41 }
 0x7ca   :  { %893 = vrot.lane.b32.xlu0 %v1168_v63, %s1287_s4  ;;  %1177 = vrcp.f32 %v394_v47 }
 0x7cb   :  { %1179 = vrcp.f32 %v1556_v44 }
 0x7cc   :  { %209 = vperm.xlu1 %1116, %v199_v21   ;;  %1181 = vrcp.f32 %v491_v55  ;;  %v698_v21 = vsub.f32 1.0, %v1614_v16 }
 0x7cd   :  { %1183 = vrcp.f32 %v1567_v49 }
 0x7ce   :  { %325 = vperm.xlu0 %1117, %v315_v22  }
 0x7d4   :  { %v1178_v24 = vpop.eup %1177 }
 0x7d5   :  { %v1180_v26 = vpop.eup %1179  ;;  %v398_v40 = vmul.f32 %v1178_v24, %v382_v41 }
 0x7d6   :  { %v1182_v43 = vpop.eup %1181  ;;  %v396_v62 = vmul.f32 %v1180_v26, %v1551_v42 }
 0x7d7   :  { %v1184_v31 = vpop.eup %1183  ;;  %v401_v35 = vmul.f32 %v1559_v46, %v398_v40  ;;  %v495_v51 = vmul.f32 %v1182_v43, %v479_v23 }
 0x7d8   :  { %v399_v39 = vmul.f32 %v396_v62, %v1556_v44  ;;  %v493_v15 = vmul.f32 %v1184_v31, %v1564_v48 }
 0x7d9   :  { %v498_v60 = vmul.f32 %v1574_v54, %v495_v51 }
 0x7da   :  { %v402_v58 = vadd.f32 %v401_v35, %v399_v39  ;;  %v496_v2 = vmul.f32 %v493_v15, %v1567_v49 }
 0x7dc   :  { %v407_v48 = vsub.f32 1.0, %v402_v58  ;;  %v499_v32 = vadd.f32 %v498_v60, %v496_v2 }
 0x7de   :  { %v504_v11 = vsub.f32 1.0, %v499_v32 }
 0x822   :  { %v870_v45 = vpop.permute.xlu1 %869 }
 0x823   :  { %v872_v57 = vmul.f32 %v870_v45, %v1640_v12 }
 0x824   :  { %v876_v61 = vpop.permute.xlu0 %875 }
 0x825   :  { %v1711_v63 = vadd.f32 %v872_v57, %v1661_v36  ;;  %v878_v42 = vmul.f32 %v876_v61, %v1640_v12 }
 0x826   :  { %v404_v46 = vpop.permute.xlu1 %403 }
 0x827   :  { %1185 = vrcp.f32 %v1711_v63  ;;  %v879_v50 = vadd.f32 %v878_v42, %v1656_v34  ;;  %v406_v3 = vmul.f32 %v404_v46, %v402_v58  ;;  %v885_v41 = vsub.f32 1.0, %v1711_v63 }
 0x828   :  { %v409_v10 = vpop.permute.xlu0 %408  ;;  %v76_v58 = vstv %s75_s16 }
 0x829   :  { %1187 = vrcp.f32 %v879_v50  ;;  %v411_v4 = vmul.f32 %v409_v10, %v407_v48  ;;  %v77_v2 = vsub.f32 %v1375_v5, %v76_v58 }
 0x82a   :  { %v501_v54 = vpop.permute.xlu1 %500 }
 0x82b   :  { %v412_v52 = vadd.f32 %v411_v4, %v406_v3  ;;  %v503_v1 = vmul.f32 %v501_v54, %v499_v32 }
 0x82c   :  { %v506_v14 = vpop.permute.xlu0 %505 }
 0x82d   :  { %v508_v6 = vmul.f32 %v506_v14, %v504_v11  ;;  %422 = vperm.xlu1 %1116, %v412_v52  }
 0x82e   :  { %v598_v12 = vpop.permute.xlu1 %597 }
 0x82f   :  { %v509_v17 = vadd.f32 %v508_v6, %v503_v1  ;;  %v600_v29 = vmul.f32 %v598_v12, %v1587_v13 }
 0x830   :  { %v603_v18 = vpop.permute.xlu0 %602 }
 0x831   :  { %v1186_v37 = vpop.eup %1185  ;;  %v605_v0 = vmul.f32 %v603_v18, %v601_v7  ;;  %519 = vperm.xlu1 %1116, %v509_v17  }
 0x832   :  { %v695_v20 = vpop.permute.xlu1 %694  ;;  %v881_v27 = vmul.f32 %v1186_v37, %v1661_v36  ;;  %v795_v36 = vsub.f32 1.0, %v1644_v19 }
 0x833   :  { %v1188_v9 = vpop.eup %1187  ;;  %v606_v28 = vadd.f32 %v605_v0, %v600_v29  ;;  %v697_v47 = vmul.f32 %v695_v20, %v1614_v16 }
 0x834   :  { %v700_v25 = vpop.permute.xlu0 %699  ;;  %v883_v22 = vmul.f32 %v1188_v9, %v1656_v34  ;;  %v884_v8 = vmul.f32 %v881_v27, %v1711_v63 }
 0x835   :  { %v702_v53 = vmul.f32 %v700_v25, %v698_v21  ;;  %616 = vperm.xlu0 %1117, %v606_v28  }
 0x836   :  { %v792_v13 = vpop.permute.xlu1 %791  ;;  %v886_v23 = vmul.f32 %v885_v41, %v883_v22 }
 0x837   :  { %v703_v55 = vadd.f32 %v702_v53, %v697_v47  ;;  %v794_v40 = vmul.f32 %v792_v13, %v1644_v19  ;;  %v155_v19 = vlaneseq }
 0x838   :  { %v797_v24 = vpop.permute.xlu0 %796  ;;  %v887_v26 = vadd.f32 %v886_v23, %v884_v8 }
 0x839   :  { %v799_v43 = vmul.f32 %v797_v24, %v795_v36  ;;  %713 = vperm.xlu1 %1116, %v703_v55   ;;  %v156_v45 = vand.u32 127, %v155_v19 }
 0x83a   :  { %v889_v34 = vpop.permute.xlu1 %888  ;;  %v892_v62 = vsub.f32 1.0, %v887_v26 }
 0x83b   :  { %v800_v31 = vadd.f32 %v799_v43, %v794_v40  ;;  %v891_v51 = vmul.f32 %v889_v34, %v887_v26  ;;  %vm200_vm7 = vcmp.eq.s32.totalorder %v156_v45, 0  ;;  %vm316_vm8 = vcmp.eq.s32.totalorder %v156_v45, 1 }
 0x83c   :  { %v894_v35 = vpop.permute.xlu0 %893  ;;  %vm413_vm9 = vcmp.eq.s32.totalorder %v156_v45, 2  ;;  %vm510_vm10 = vcmp.eq.s32.totalorder %v156_v45, 3  ;;  %vm607_vm11 = vcmp.eq.s32.totalorder %v156_v45, 4  ;;  %vm704_vm12 = vcmp.eq.s32.totalorder %v156_v45, 5 }
 0x83d   :  { %v896_v39 = vmul.f32 %v894_v35, %v892_v62  ;;  %810 = vperm.xlu0 %1117, %v800_v31   ;;  %vm801_vm13 = vcmp.eq.s32.totalorder %v156_v45, 6  ;;  %vm898_vm14 = vcmp.eq.s32.totalorder %v156_v45, 7 }
 0x83f   :  { %v897_v16 = vadd.f32 %v896_v39, %v891_v51 }
 0x841   :  { %907 = vperm.xlu1 %1116, %v897_v16  }
 0x845   :  { %203 = vperm.xlu1 %1116, %v1530_v33  }
 0x849   :  { %319 = vperm.xlu1 %1116, %v1543_v38  }
 0x84b   :  { %v210_v15 = vpop.permute.xlu1 %209 }
 0x84c   :  { %v212_v38 = vsel %vm200_vm7, %v210_v15, 0.0 }
 0x84d   :  { %416 = vperm.xlu1 %1116, %v1556_v44   ;;  %v326_v33 = vpop.permute.xlu0 %325 }
 0x851   :  { %513 = vperm.xlu1 %1116, %v1567_v49  }
 0x855   :  { %610 = vperm.xlu1 %1116, %v1579_v59   ;;  %v328_v59 = vsel %vm316_vm8, %v326_v33, %v212_v38 }
 0x859   :  { %707 = vperm.xlu1 %1116, %v1607_v56  }
 0x85d   :  { %804 = vperm.xlu1 %1116, %v1634_v30  }
 0x861   :  { %901 = vperm.xlu1 %1116, %v1711_v63  }
 0x8ac   :  { %v423_v57 = vpop.permute.xlu1 %422 }
 0x8ad   :  { %v425_v56 = vsel %vm413_vm9, %v423_v57, %v328_v59 }
 0x8b0   :  { %v520_v44 = vpop.permute.xlu1 %519 }
 0x8b1   :  { %v522_v60 = vsel %vm510_vm10, %v520_v44, %v425_v56 }
 0x8b4   :  { %v617_v49 = vpop.permute.xlu0 %616 }
 0x8b5   :  { %v619_v63 = vsel %vm607_vm11, %v617_v49, %v522_v60 }
 0x8b8   :  { %v714_v30 = vpop.permute.xlu1 %713 }
 0x8b9   :  { %v716_v42 = vsel %vm704_vm12, %v714_v30, %v619_v63 }
 0x8bc   :  { %v811_v61 = vpop.permute.xlu0 %810 }
 0x8bd   :  { %v813_v46 = vsel %vm801_vm13, %v811_v61, %v716_v42 }
 0x8c0   :  { %v908_v50 = vpop.permute.xlu1 %907 }
 0x8c1   :  { %v910_v48 = vsel %vm898_vm14, %v908_v50, %v813_v46 }
 0x8c2   :  { %911 = vst.msk [vmem:[#allocation7] sm:$0x1] %vm46_vm3, %v910_v48  ;;  %v913_v32 = vmul.f32 %v910_v48, %v77_v2 }
 0x8c4   :  { %v204_v10 = vpop.permute.xlu1 %203  ;;  %v914_v3 = vsel %vm46_vm3, %v913_v32, 0.0 }
 0x8c5   :  { %915 = vadd.xlane.f32.xlu0 %v914_v3  ;;  %v206_v1 = vsel %vm200_vm7, %v204_v10, 0.0 }
 0x8c8   :  { %v320_v4 = vpop.permute.xlu1 %319 }
 0x8c9   :  { %v322_v5 = vsel %vm316_vm8, %v320_v4, %v206_v1 }
 0x8cc   :  { %v417_v54 = vpop.permute.xlu1 %416 }
 0x8cd   :  { %v419_v6 = vsel %vm413_vm9, %v417_v54, %v322_v5 }
 0x8d0   :  { %v514_v52 = vpop.permute.xlu1 %513 }
 0x8d1   :  { %v516_v17 = vsel %vm510_vm10, %v514_v52, %v419_v6 }
 0x8d4   :  { %v611_v11 = vpop.permute.xlu1 %610 }
 0x8d5   :  { %v613_v7 = vsel %vm607_vm11, %v611_v11, %v516_v17 }
 0x8d8   :  { %v708_v14 = vpop.permute.xlu1 %707 }
 0x8d9   :  { %v710_v18 = vsel %vm704_vm12, %v708_v14, %v613_v7 }
 0x8dc   :  { %v805_v12 = vpop.permute.xlu1 %804 }
 0x8dd   :  { %v807_v37 = vsel %vm801_vm13, %v805_v12, %v710_v18 }
 0x8e0   :  { %v902_v29 = vpop.permute.xlu1 %901 }
 0x8e1   :  { %v904_v0 = vsel %vm898_vm14, %v902_v29, %v807_v37 }
 0x8e2   :  { %912 = vst.msk [vmem:[#allocation8] sm:$0x1] %vm46_vm3, %v904_v0 }
 0x8e3   :  { %1222 = shalt.err (!%p1219_p12)
}
 0x8e4   :  { %s1223_s24 = scalar_lea.hbm %s1800_s8, 16 }
 0x8e5   :  { %p1224_p13 = scmp.ne.s32.totalorder %s1800_s8, %s1223_s24  ;;  %p1227_p0 = scmp.lt.u32.totalorder %s1223_s24, %s1800_s8 }
 0x8e7   :  { %p1229_p1 = pnand %p1227_p0, %p1224_p13 }
 0x8e9   :  { %1232 = shalt.err (!%p1229_p1)
}
 0x8ea   :  { %947 = dma.vmem_to_hbm [thread:$0]  %s945_s18, 16, %s1800_s8, [#allocation9]  }
 0x8eb   :  { %s1233_s1 = scalar_lea.vmem %s935_s20, 16  ;;  %s1237_s29 = scalar_lea.vmem %s935_s20, 32 }
 0x8ec   :  { %p1234_p2 = scmp.ne.s32.totalorder %s935_s20, %s1233_s1  ;;  %p1238_p3 = scmp.lt.s32.totalorder %s935_s20, %s935_s20 }
 0x8ed   :  { %p1239_p4 = scmp.lt.s32.totalorder %s1237_s29, %s1233_s1 }
 0x8ef   :  { %p1240_p5 = por %p1239_p4, %p1238_p3 }
 0x8f1   :  { %p1241_p6 = pnand %p1240_p5, %p1234_p2 }
 0x8f3   :  { %1244 = shalt.err (!%p1241_p6)
}
 0x8f4   :  { %s1245_s10 = scalar_lea.hbm %s1799_s7, 16 }
 0x8f5   :  { %p1246_p7 = scmp.ne.s32.totalorder %s1799_s7, %s1245_s10  ;;  %p1249_p8 = scmp.lt.u32.totalorder %s1245_s10, %s1799_s7 }
 0x8f7   :  { %p1251_p9 = pnand %p1249_p8, %p1246_p7 }
 0x8f9   :  { %1254 = shalt.err (!%p1251_p9)
}
 0x8fa   :  { %937 = dma.vmem_to_hbm [thread:$0]  %s935_s20, 16, %s1799_s7, [#allocation6]   ;;  %vm926_vm15 = vcmask 0  }
 0x8fb   :  { %s1293_s14 = smov [#allocation10]  }
 0x8fc   :  { %s954_s15 = sshll.u32 %s1293_s14, 4  ;;  %s955_s15 = int_to_ptr.vmem [resolvable:$true] %s954_s15 }
 0x8fd   :  { %s1255_s17 = scalar_lea.vmem %s955_s15, 16  ;;  %s1259_s18 = scalar_lea.vmem %s955_s15, 32 }
 0x8fe   :  { %p1256_p10 = scmp.ne.s32.totalorder %s955_s15, %s1255_s17  ;;  %p1260_p11 = scmp.lt.s32.totalorder %s955_s15, %s955_s15 }
 0x8ff   :  { %p1261_p12 = scmp.lt.s32.totalorder %s1259_s18, %s1255_s17 }
 0x901   :  { %p1262_p13 = por %p1261_p12, %p1260_p11 }
 0x903   :  { %p1263_p0 = pnand %p1262_p13, %p1256_p10 }
 0x952   :  { %v916_v20 = vpop.xlane.xlu0 %915 }
 0x953   :  { %v917_v27 = vrot.slane %v916_v20, 4 }
 0x955   :  { %v918_v9 = vadd.f32 %v917_v27, %v916_v20 }
 0x957   :  { %v919_v28 = vrot.slane %v918_v9, 2 }
 0x959   :  { %v920_v21 = vadd.f32 %v919_v28, %v918_v9 }
 0x95b   :  { %v921_v25 = vrot.slane %v920_v21, 1 }
 0x95d   :  { %v922_v22 = vadd.f32 %v921_v25, %v920_v21 }
 0x95f   :  { %1103 = vpush %v922_v22 }
 0x990   :  { %s1104_s16 = spop %1103 }
 0x991   :  { %v924_v8 = vstv %s1104_s16 }
 0x992   :  { %v925_v41 = vsub.f32 0.0, %v924_v8 }
 0x994   :  { %927 = vst.msk [vmem:[#allocation10] sm:$0x1] %vm926_vm15, %v925_v41 }
 0x995   :  { %1266 = shalt.err (!%p1263_p0)
}
 0x996   :  { %s1267_s20 = scalar_lea.hbm %s1801_s9, 16 }
 0x997   :  { %p1268_p1 = scmp.ne.s32.totalorder %s1801_s9, %s1267_s20  ;;  %p1271_p2 = scmp.lt.u32.totalorder %s1267_s20, %s1801_s9 }
 0x999   :  { %p1273_p3 = pnand %p1271_p2, %p1268_p1 }
 0x99b   :  { %1276 = shalt.err (!%p1273_p3)
}
 0x99c   :  { %957 = dma.vmem_to_hbm [thread:$0]  %s955_s15, 16, %s1801_s9, [#allocation9]  }
 0x99d   :  { %1279 = dma.done.wait [#allocation6], 16  }
 0x99e   :  { %1280 = vsyncadd [#allocation6], 4294967280 }
 0x99f   :  { %1281 = dma.done.wait [#allocation9], 32  }
 0x9a0   :  { %1282 = vsyncadd [#allocation9], 4294967264 }
 0x9a1   :  { %967 = vsyncpa [#allocation5], 1 }
 0x9a2   :  { %968 = vsyncpa [#allocation6], 1 }
 0x9a3   :  { %969 = vsyncpa [#allocation9], 1 }

</bundles_post_ra>
